<compile_context>
chip_gen: v7x
topology: tpu7x:2x2x1
jax: 0.10.0
libtpu: 0.0.40
codegen_flags: <defaults>
</compile_context>

<pallas_src>
import functools

import jax
import jax.numpy as jnp
from jax import lax
from jax.experimental import pallas as pl
from jax.experimental.pallas import tpu as pltpu


_SEQ_K_MAX = 16                       # small-k path vs threshold-search path
_IMAX = (1 << 31) - 1                 # 0x7FFFFFFF


def _magnitude_keys(xs):
    """int32 keys, strictly monotone in |x| (NaN ranks above +inf)."""
    bits = pltpu.bitcast(xs.astype(jnp.float32), jnp.int32)
    return bits & jnp.int32(_IMAX)    # clear sign bit -> |x| bit pattern


def _topk_abs_kernel(x_ref, o_ref, *, k: int, nc: int, cw: int, n_row: int):
    """Top-k-by-|value| masking of a (TB, NC, 8, CW) block resident in VMEM."""
    tb = x_ref.shape[0]
    rr = x_ref.shape[2]               # 8 sublane rows per chunk
    vshape = (tb, 1, 1, 1)
    imax = jnp.int32(_IMAX)

    def load_chunk(ci):
        return x_ref[:, pl.ds(ci, 1), :, :]               # (TB, 1, 8, CW)

    def chunk_idx(shape, ci):
        # Original row-major flat index of every element of chunk `ci`
        # (regenerated per pass -- nothing index-shaped stays live).
        r_i = lax.broadcasted_iota(jnp.int32, shape, 2)
        c_i = lax.broadcasted_iota(jnp.int32, shape, 3)
        return ci * (rr * cw) + r_i * cw + c_i

    def chunk_loop(body, init):
        if nc <= 4:                                       # tiny carried state
            carry = init
            for ci in range(nc):
                carry = body(ci, carry)
            return carry
        return lax.fori_loop(0, nc, body, init, unroll=False)

    if k <= _SEQ_K_MAX:
        # ---- Path A: k sequential lexicographic-max passes (small k) ------
        def select_next(prev_key, prev_idx):
            def body(ci, carry):
                best_key, best_idx = carry
                xs = load_chunk(ci)
                keys = _magnitude_keys(xs)
                idx = chunk_idx(keys.shape, ci)
                # strictly after (prev_key, prev_idx) in (key desc, idx asc)
                elig = (keys < prev_key) | ((keys == prev_key) &
                                            (idx > prev_idx))
                mk = jnp.where(elig, keys, jnp.int32(-1))
                cmax = jnp.max(mk, axis=(2, 3), keepdims=True)
                cidx = jnp.where(mk == cmax, idx, imax)
                carg = jnp.min(cidx, axis=(2, 3), keepdims=True)
                take = cmax > best_key
                same = cmax == best_key
                best_idx = jnp.where(
                    take, carg,
                    jnp.where(same, jnp.minimum(best_idx, carg), best_idx))
                best_key = jnp.maximum(best_key, cmax)
                return best_key, best_idx

            init = (jnp.full(vshape, -1, jnp.int32),
                    jnp.full(vshape, _IMAX, jnp.int32))
            return chunk_loop(body, init)

        sel_key = jnp.full(vshape, _IMAX, jnp.int32)
        sel_idx = jnp.full(vshape, -1, jnp.int32)
        for _ in range(k):                                # k is small & static
            sel_key, sel_idx = select_next(sel_key, sel_idx)
        thr, cut = sel_key, sel_idx + 1
    else:
        # ---- Path B: bitwise threshold search (cost independent of k) -----
        def count_where(pred, with_idx):
            def body(ci, cnt):
                xs = load_chunk(ci)
                keys = _magnitude_keys(xs)
                if with_idx:
                    p = pred(keys, chunk_idx(keys.shape, ci))
                else:
                    p = pred(keys)
                return cnt + jnp.sum(p.astype(jnp.int32), axis=(2, 3),
                                     keepdims=True)
            return chunk_loop(body, jnp.zeros(vshape, jnp.int32))

        # (1) per-row k-th largest key via 31-bit greedy search.
        def key_bit(i, thr):
            cand = thr | (jnp.int32(1) << (jnp.int32(30) - i))
            cnt = count_where(lambda keys: keys >= cand, with_idx=False)
            return jnp.where(cnt >= k, cand, thr)

        thr = lax.fori_loop(0, 31, key_bit, jnp.zeros(vshape, jnp.int32))

        # (2) how many elements tied at the threshold we still need per row.
        needed = jnp.int32(k) - count_where(lambda keys: keys > thr,
                                            with_idx=False)

        # (3) per-row exclusive index cutoff among the ties (bit search).
        idx_bits = max(1, int(n_row).bit_length())

        def cut_bit(i, cut):
            cand = cut | (jnp.int32(1) << (jnp.int32(idx_bits - 1) - i))
            cnt = count_where(lambda keys, idx: (keys == thr) & (idx < cand),
                              with_idx=True)
            return jnp.where(cnt <= needed, cand, cut)

        cut = lax.fori_loop(0, idx_bits, cut_bit,
                            jnp.zeros(vshape, jnp.int32))

    # ---- Final masked writeback (shared by both paths) ---------------------
    def write_body(ci, carry):
        xs = load_chunk(ci)
        keys = _magnitude_keys(xs)
        idx = chunk_idx(keys.shape, ci)
        keep = (keys > thr) | ((keys == thr) & (idx < cut))
        o_ref[:, pl.ds(ci, 1), :, :] = jnp.where(keep, xs,
                                                 jnp.zeros_like(xs))
        return carry

    chunk_loop(write_body, jnp.int32(0))


def topk_absolutes_2d(x: jax.Array, k: int) -> jax.Array:
    """JAX/Pallas equivalent of the PyTorch topk_absolutes_2d."""
    orig_shape = x.shape
    B = x.shape[0]
    x_flat = x.reshape(B, -1)
    N = x_flat.shape[1]

    if not (0 <= k <= N):
        raise ValueError(f"k={k} must satisfy 0 <= k <= {N}")
    if k == 0:
        return jnp.zeros_like(x)
    if k == N:
        return x

    R, LANE = 8, 128
    unit = R * LANE
    n_pad = pl.cdiv(N, unit) * unit
    if n_pad != N:
        # Zero padding can never displace a real element from the top-k
        # (pad flat-indices are >= N and ties break toward the smaller index).
        x_flat = jnp.pad(x_flat, ((0, 0), (0, n_pad - N)))

    # --- generation-aware VMEM limit and batch-tile sizing ------------------
    try:
        vmem_cap = int(pltpu.get_tpu_info().vmem_capacity_bytes)
    except Exception:
        vmem_cap = 64 * 1024 * 1024                      # conservative (v7x)
    vmem_limit = int(min(vmem_cap * 5 // 8, 96 * 1024 * 1024))

    itemsize = jnp.dtype(x.dtype).itemsize
    row_block_bytes = 2 * n_pad * itemsize               # in + out per row
    budget = max(vmem_limit // 8, 256 * 1024)
    TB = max(1, min(B, budget // max(row_block_bytes, 1)))
    if B >= 4:
        TB = min(TB, pl.cdiv(B, 4))     # >= 2 grid steps per core (megacore)
    elif B > 1:
        TB = min(TB, pl.cdiv(B, 2))
    TB = min(TB, 8)                      # keep per-chunk temporaries in vregs

    C_total = n_pad // R                                  # multiple of 128
    target_chunk = 8 * 1024                               # elems per chunk
    cw = min(C_total, max(LANE, (target_chunk // (TB * R)) // LANE * LANE))
    while C_total % cw:
        cw -= LANE
    nc = C_total // cw

    x4 = x_flat.reshape(B, nc, R, cw)
    grid = (pl.cdiv(B, TB),)

    if k <= _SEQ_K_MAX:
        passes = k + 1
    else:
        passes = 31 + 1 + max(1, int(n_pad).bit_length()) + 1
    cost = pl.CostEstimate(
        flops=10 * passes * B * n_pad,
        transcendentals=0,
        bytes_accessed=2 * B * n_pad * itemsize,
    )

    out4 = pl.pallas_call(
        functools.partial(_topk_abs_kernel, k=k, nc=nc, cw=cw, n_row=n_pad),
        out_shape=jax.ShapeDtypeStruct((B, nc, R, cw), x.dtype),
        grid_spec=pltpu.PrefetchScalarGridSpec(
            num_scalar_prefetch=0,
            grid=grid,
            in_specs=[pl.BlockSpec((TB, nc, R, cw), lambda i: (i, 0, 0, 0))],
            out_specs=pl.BlockSpec((TB, nc, R, cw), lambda i: (i, 0, 0, 0)),
        ),
        compiler_params=pltpu.CompilerParams(
            dimension_semantics=("parallel",),
            vmem_limit_bytes=vmem_limit,
        ),
        cost_estimate=cost,
        input_output_aliases={0: 0},
    )(x4)

    out_flat = out4.reshape(B, n_pad)
    if n_pad != N:
        out_flat = out_flat[:, :N]
    return out_flat.reshape(orig_shape)


class TopKAbsolutes2D:
    """Stateless module mirroring the PyTorch nn.Module (k only, no weights)."""

    def __init__(self, k: int):
        self.k = k

    def __call__(self, x: jax.Array) -> jax.Array:
        return topk_absolutes_2d(x, self.k)


def _reference(x: jax.Array, k: int) -> jax.Array:
    """Pure-JAX reference (lax.top_k ties break to the smallest index too)."""
    B = x.shape[0]
    xf = x.reshape(B, -1)
    _, idx = lax.top_k(jnp.abs(xf), k)
    mask = jnp.zeros_like(xf, dtype=bool)
    mask = jax.vmap(lambda m, i: m.at[i].set(True))(mask, idx)
    return jnp.where(mask, xf, 0).reshape(x.shape)


if __name__ == "__main__":
    key = jax.random.PRNGKey(0)
    key1, key2 = jax.random.split(key)

    # Case 1: aligned N (= 1024), small k -> sequential-selection path.
    B, C, H, W = 2, 4, 16, 16
    kk = 8
    x = jax.random.normal(key1, (B, C, H, W), dtype=jnp.float32)
    ref = _reference(x, kk)

    mod = TopKAbsolutes2D(kk)
    out = mod(x)
    jax.block_until_ready(out)

    assert out.shape == x.shape and out.dtype == x.dtype
    assert jnp.array_equal(out, ref), "mismatch vs reference (k=8)"
    nnz = jnp.sum(out.reshape(B, -1) != 0.0, axis=-1)
    assert bool(jnp.all(nnz == kk))

    # Case 2: larger k -> bitwise threshold-search path.
    out_big = TopKAbsolutes2D(100)(x)
    jax.block_until_ready(out_big)
    assert jnp.array_equal(out_big, _reference(x, 100)), "mismatch (k=100)"

    # Case 3: unaligned N (= 105, padded to 1024 internally).
    x2 = jax.random.normal(key2, (2, 3, 5, 7), dtype=jnp.float32)
    out2 = TopKAbsolutes2D(5)(x2)
    jax.block_until_ready(out2)
    assert jnp.array_equal(out2, _reference(x2, 5)), "mismatch (padded case)"

    print("KERNEL_OK")
</pallas_src>

<mosaic_0001>
module attributes {stable_mosaic.version = 11 : i64} {
  func.func @_topk_abs_kernel(%arg0: i32, %arg1: memref<1x1x8x128xf32, #tpu.memory_space<vmem>>, %arg2: memref<1x1x8x128xf32, #tpu.memory_space<vmem>>) attributes {dimension_semantics = [#tpu.dimension_semantics<parallel>], iteration_bounds = array<i64: 2>, scalar_prefetch = 0 : i64, scratch_operands = 0 : i64, tpu.core_type = #tpu.core_type<tc>, window_params = [{transform_indices = @transform_0, window_bounds = array<i64: 1, 1, 8, 128>}, {transform_indices = @transform_1, window_bounds = array<i64: 1, 1, 8, 128>}]} {
    %c2147483647_i32 = arith.constant 2147483647 : i32
    %0 = vector.broadcast %c2147483647_i32 : i32 to vector<1x1x1x1xi32>
    %c-1_i32 = arith.constant -1 : i32
    %1 = vector.broadcast %c-1_i32 : i32 to vector<1x1x1x1xi32>
    %c-1_i32_0 = arith.constant -1 : i32
    %2 = vector.broadcast %c-1_i32_0 : i32 to vector<1x1x1x1xi32>
    %c2147483647_i32_1 = arith.constant 2147483647 : i32
    %3 = vector.broadcast %c2147483647_i32_1 : i32 to vector<1x1x1x1xi32>
    %c0 = arith.constant 0 : index
    %c0_2 = arith.constant 0 : index
    %c0_3 = arith.constant 0 : index
    %c0_4 = arith.constant 0 : index
    %4 = vector.load %arg1[%c0, %c0_2, %c0_3, %c0_4] : memref<1x1x8x128xf32, #tpu.memory_space<vmem>>, vector<1x1x8x128xf32>
    %5 = tpu.bitcast %4 : vector<1x1x8x128xf32> -> vector<1x1x8x128xi32>
    %c2147483647_i32_5 = arith.constant 2147483647 : i32
    %6 = vector.broadcast %c2147483647_i32_5 : i32 to vector<1x1x8x128xi32>
    %7 = arith.andi %5, %6 : vector<1x1x8x128xi32>
    %8 = tpu.iota {dimensions = array<i32: 2>} : vector<1x1x8x128xi32>
    %9 = tpu.iota {dimensions = array<i32: 3>} : vector<1x1x8x128xi32>
    %c128_i32 = arith.constant 128 : i32
    %10 = vector.broadcast %c128_i32 : i32 to vector<1x1x8x128xi32>
    %11 = arith.muli %8, %10 : vector<1x1x8x128xi32>
    %c0_i32 = arith.constant 0 : i32
    %12 = vector.broadcast %c0_i32 : i32 to vector<1x1x8x128xi32>
    %13 = arith.addi %12, %11 : vector<1x1x8x128xi32>
    %14 = arith.addi %13, %9 : vector<1x1x8x128xi32>
    %15 = vector.broadcast %0 : vector<1x1x1x1xi32> to vector<1x1x8x128xi32>
    %16 = arith.cmpi slt, %7, %15 : vector<1x1x8x128xi32>
    %17 = vector.broadcast %0 : vector<1x1x1x1xi32> to vector<1x1x8x128xi32>
    %18 = arith.cmpi eq, %7, %17 : vector<1x1x8x128xi32>
    %19 = vector.broadcast %1 : vector<1x1x1x1xi32> to vector<1x1x8x128xi32>
    %20 = arith.cmpi sgt, %14, %19 : vector<1x1x8x128xi32>
    %21 = arith.andi %18, %20 : vector<1x1x8x128xi1>
    %22 = arith.ori %16, %21 : vector<1x1x8x128xi1>
    %c-1_i32_6 = arith.constant -1 : i32
    %23 = vector.broadcast %c-1_i32_6 : i32 to vector<1x1x8x128xi32>
    %24 = arith.select %22, %7, %23 : vector<1x1x8x128xi1>, vector<1x1x8x128xi32>
    %cst = arith.constant dense<-2147483648> : vector<1x1xi32>
    %25 = vector.multi_reduction <maxsi>, %24, %cst [2, 3] : vector<1x1x8x128xi32> to vector<1x1xi32>
    %26 = vector.shape_cast %25 : vector<1x1xi32> to vector<1x1x1x1xi32>
    %27 = vector.broadcast %26 : vector<1x1x1x1xi32> to vector<1x1x8x128xi32>
    %28 = arith.cmpi eq, %24, %27 : vector<1x1x8x128xi32>
    %c2147483647_i32_7 = arith.constant 2147483647 : i32
    %29 = vector.broadcast %c2147483647_i32_7 : i32 to vector<1x1x8x128xi32>
    %30 = arith.select %28, %14, %29 : vector<1x1x8x128xi1>, vector<1x1x8x128xi32>
    %cst_8 = arith.constant dense<2147483647> : vector<1x1xi32>
    %31 = vector.multi_reduction <minsi>, %30, %cst_8 [2, 3] : vector<1x1x8x128xi32> to vector<1x1xi32>
    %32 = vector.shape_cast %31 : vector<1x1xi32> to vector<1x1x1x1xi32>
    %33 = arith.cmpi sgt, %26, %2 : vector<1x1x1x1xi32>
    %34 = arith.cmpi eq, %26, %2 : vector<1x1x1x1xi32>
    %35 = arith.minsi %3, %32 : vector<1x1x1x1xi32>
    %36 = arith.select %34, %35, %3 : vector<1x1x1x1xi1>, vector<1x1x1x1xi32>
    %37 = arith.select %33, %32, %36 : vector<1x1x1x1xi1>, vector<1x1x1x1xi32>
    %38 = arith.maxsi %2, %26 : vector<1x1x1x1xi32>
    %c-1_i32_9 = arith.constant -1 : i32
    %39 = vector.broadcast %c-1_i32_9 : i32 to vector<1x1x1x1xi32>
    %c2147483647_i32_10 = arith.constant 2147483647 : i32
    %40 = vector.broadcast %c2147483647_i32_10 : i32 to vector<1x1x1x1xi32>
    %c0_11 = arith.constant 0 : index
    %c0_12 = arith.constant 0 : index
    %c0_13 = arith.constant 0 : index
    %c0_14 = arith.constant 0 : index
    %41 = vector.load %arg1[%c0_11, %c0_12, %c0_13, %c0_14] : memref<1x1x8x128xf32, #tpu.memory_space<vmem>>, vector<1x1x8x128xf32>
    %42 = tpu.bitcast %41 : vector<1x1x8x128xf32> -> vector<1x1x8x128xi32>
    %c2147483647_i32_15 = arith.constant 2147483647 : i32
    %43 = vector.broadcast %c2147483647_i32_15 : i32 to vector<1x1x8x128xi32>
    %44 = arith.andi %42, %43 : vector<1x1x8x128xi32>
    %45 = tpu.iota {dimensions = array<i32: 2>} : vector<1x1x8x128xi32>
    %46 = tpu.iota {dimensions = array<i32: 3>} : vector<1x1x8x128xi32>
    %c128_i32_16 = arith.constant 128 : i32
    %47 = vector.broadcast %c128_i32_16 : i32 to vector<1x1x8x128xi32>
    %48 = arith.muli %45, %47 : vector<1x1x8x128xi32>
    %c0_i32_17 = arith.constant 0 : i32
    %49 = vector.broadcast %c0_i32_17 : i32 to vector<1x1x8x128xi32>
    %50 = arith.addi %49, %48 : vector<1x1x8x128xi32>
    %51 = arith.addi %50, %46 : vector<1x1x8x128xi32>
    %52 = vector.broadcast %38 : vector<1x1x1x1xi32> to vector<1x1x8x128xi32>
    %53 = arith.cmpi slt, %44, %52 : vector<1x1x8x128xi32>
    %54 = vector.broadcast %38 : vector<1x1x1x1xi32> to vector<1x1x8x128xi32>
    %55 = arith.cmpi eq, %44, %54 : vector<1x1x8x128xi32>
    %56 = vector.broadcast %37 : vector<1x1x1x1xi32> to vector<1x1x8x128xi32>
    %57 = arith.cmpi sgt, %51, %56 : vector<1x1x8x128xi32>
    %58 = arith.andi %55, %57 : vector<1x1x8x128xi1>
    %59 = arith.ori %53, %58 : vector<1x1x8x128xi1>
    %c-1_i32_18 = arith.constant -1 : i32
    %60 = vector.broadcast %c-1_i32_18 : i32 to vector<1x1x8x128xi32>
    %61 = arith.select %59, %44, %60 : vector<1x1x8x128xi1>, vector<1x1x8x128xi32>
    %cst_19 = arith.constant dense<-2147483648> : vector<1x1xi32>
    %62 = vector.multi_reduction <maxsi>, %61, %cst_19 [2, 3] : vector<1x1x8x128xi32> to vector<1x1xi32>
    %63 = vector.shape_cast %62 : vector<1x1xi32> to vector<1x1x1x1xi32>
    %64 = vector.broadcast %63 : vector<1x1x1x1xi32> to vector<1x1x8x128xi32>
    %65 = arith.cmpi eq, %61, %64 : vector<1x1x8x128xi32>
    %c2147483647_i32_20 = arith.constant 2147483647 : i32
    %66 = vector.broadcast %c2147483647_i32_20 : i32 to vector<1x1x8x128xi32>
    %67 = arith.select %65, %51, %66 : vector<1x1x8x128xi1>, vector<1x1x8x128xi32>
    %cst_21 = arith.constant dense<2147483647> : vector<1x1xi32>
    %68 = vector.multi_reduction <minsi>, %67, %cst_21 [2, 3] : vector<1x1x8x128xi32> to vector<1x1xi32>
    %69 = vector.shape_cast %68 : vector<1x1xi32> to vector<1x1x1x1xi32>
    %70 = arith.cmpi sgt, %63, %39 : vector<1x1x1x1xi32>
    %71 = arith.cmpi eq, %63, %39 : vector<1x1x1x1xi32>
    %72 = arith.minsi %40, %69 : vector<1x1x1x1xi32>
    %73 = arith.select %71, %72, %40 : vector<1x1x1x1xi1>, vector<1x1x1x1xi32>
    %74 = arith.select %70, %69, %73 : vector<1x1x1x1xi1>, vector<1x1x1x1xi32>
    %75 = arith.maxsi %39, %63 : vector<1x1x1x1xi32>
    %c-1_i32_22 = arith.constant -1 : i32
    %76 = vector.broadcast %c-1_i32_22 : i32 to vector<1x1x1x1xi32>
    %c2147483647_i32_23 = arith.constant 2147483647 : i32
    %77 = vector.broadcast %c2147483647_i32_23 : i32 to vector<1x1x1x1xi32>
    %c0_24 = arith.constant 0 : index
    %c0_25 = arith.constant 0 : index
    %c0_26 = arith.constant 0 : index
    %c0_27 = arith.constant 0 : index
    %78 = vector.load %arg1[%c0_24, %c0_25, %c0_26, %c0_27] : memref<1x1x8x128xf32, #tpu.memory_space<vmem>>, vector<1x1x8x128xf32>
    %79 = tpu.bitcast %78 : vector<1x1x8x128xf32> -> vector<1x1x8x128xi32>
    %c2147483647_i32_28 = arith.constant 2147483647 : i32
    %80 = vector.broadcast %c2147483647_i32_28 : i32 to vector<1x1x8x128xi32>
    %81 = arith.andi %79, %80 : vector<1x1x8x128xi32>
    %82 = tpu.iota {dimensions = array<i32: 2>} : vector<1x1x8x128xi32>
    %83 = tpu.iota {dimensions = array<i32: 3>} : vector<1x1x8x128xi32>
    %c128_i32_29 = arith.constant 128 : i32
    %84 = vector.broadcast %c128_i32_29 : i32 to vector<1x1x8x128xi32>
    %85 = arith.muli %82, %84 : vector<1x1x8x128xi32>
    %c0_i32_30 = arith.constant 0 : i32
    %86 = vector.broadcast %c0_i32_30 : i32 to vector<1x1x8x128xi32>
    %87 = arith.addi %86, %85 : vector<1x1x8x128xi32>
    %88 = arith.addi %87, %83 : vector<1x1x8x128xi32>
    %89 = vector.broadcast %75 : vector<1x1x1x1xi32> to vector<1x1x8x128xi32>
    %90 = arith.cmpi slt, %81, %89 : vector<1x1x8x128xi32>
    %91 = vector.broadcast %75 : vector<1x1x1x1xi32> to vector<1x1x8x128xi32>
    %92 = arith.cmpi eq, %81, %91 : vector<1x1x8x128xi32>
    %93 = vector.broadcast %74 : vector<1x1x1x1xi32> to vector<1x1x8x128xi32>
    %94 = arith.cmpi sgt, %88, %93 : vector<1x1x8x128xi32>
    %95 = arith.andi %92, %94 : vector<1x1x8x128xi1>
    %96 = arith.ori %90, %95 : vector<1x1x8x128xi1>
    %c-1_i32_31 = arith.constant -1 : i32
    %97 = vector.broadcast %c-1_i32_31 : i32 to vector<1x1x8x128xi32>
    %98 = arith.select %96, %81, %97 : vector<1x1x8x128xi1>, vector<1x1x8x128xi32>
    %cst_32 = arith.constant dense<-2147483648> : vector<1x1xi32>
    %99 = vector.multi_reduction <maxsi>, %98, %cst_32 [2, 3] : vector<1x1x8x128xi32> to vector<1x1xi32>
    %100 = vector.shape_cast %99 : vector<1x1xi32> to vector<1x1x1x1xi32>
    %101 = vector.broadcast %100 : vector<1x1x1x1xi32> to vector<1x1x8x128xi32>
    %102 = arith.cmpi eq, %98, %101 : vector<1x1x8x128xi32>
    %c2147483647_i32_33 = arith.constant 2147483647 : i32
    %103 = vector.broadcast %c2147483647_i32_33 : i32 to vector<1x1x8x128xi32>
    %104 = arith.select %102, %88, %103 : vector<1x1x8x128xi1>, vector<1x1x8x128xi32>
    %cst_34 = arith.constant dense<2147483647> : vector<1x1xi32>
    %105 = vector.multi_reduction <minsi>, %104, %cst_34 [2, 3] : vector<1x1x8x128xi32> to vector<1x1xi32>
    %106 = vector.shape_cast %105 : vector<1x1xi32> to vector<1x1x1x1xi32>
    %107 = arith.cmpi sgt, %100, %76 : vector<1x1x1x1xi32>
    %108 = arith.cmpi eq, %100, %76 : vector<1x1x1x1xi32>
    %109 = arith.minsi %77, %106 : vector<1x1x1x1xi32>
    %110 = arith.select %108, %109, %77 : vector<1x1x1x1xi1>, vector<1x1x1x1xi32>
    %111 = arith.select %107, %106, %110 : vector<1x1x1x1xi1>, vector<1x1x1x1xi32>
    %112 = arith.maxsi %76, %100 : vector<1x1x1x1xi32>
    %c-1_i32_35 = arith.constant -1 : i32
    %113 = vector.broadcast %c-1_i32_35 : i32 to vector<1x1x1x1xi32>
    %c2147483647_i32_36 = arith.constant 2147483647 : i32
    %114 = vector.broadcast %c2147483647_i32_36 : i32 to vector<1x1x1x1xi32>
    %c0_37 = arith.constant 0 : index
    %c0_38 = arith.constant 0 : index
    %c0_39 = arith.constant 0 : index
    %c0_40 = arith.constant 0 : index
    %115 = vector.load %arg1[%c0_37, %c0_38, %c0_39, %c0_40] : memref<1x1x8x128xf32, #tpu.memory_space<vmem>>, vector<1x1x8x128xf32>
    %116 = tpu.bitcast %115 : vector<1x1x8x128xf32> -> vector<1x1x8x128xi32>
    %c2147483647_i32_41 = arith.constant 2147483647 : i32
    %117 = vector.broadcast %c2147483647_i32_41 : i32 to vector<1x1x8x128xi32>
    %118 = arith.andi %116, %117 : vector<1x1x8x128xi32>
    %119 = tpu.iota {dimensions = array<i32: 2>} : vector<1x1x8x128xi32>
    %120 = tpu.iota {dimensions = array<i32: 3>} : vector<1x1x8x128xi32>
    %c128_i32_42 = arith.constant 128 : i32
    %121 = vector.broadcast %c128_i32_42 : i32 to vector<1x1x8x128xi32>
    %122 = arith.muli %119, %121 : vector<1x1x8x128xi32>
    %c0_i32_43 = arith.constant 0 : i32
    %123 = vector.broadcast %c0_i32_43 : i32 to vector<1x1x8x128xi32>
    %124 = arith.addi %123, %122 : vector<1x1x8x128xi32>
    %125 = arith.addi %124, %120 : vector<1x1x8x128xi32>
    %126 = vector.broadcast %112 : vector<1x1x1x1xi32> to vector<1x1x8x128xi32>
    %127 = arith.cmpi slt, %118, %126 : vector<1x1x8x128xi32>
    %128 = vector.broadcast %112 : vector<1x1x1x1xi32> to vector<1x1x8x128xi32>
    %129 = arith.cmpi eq, %118, %128 : vector<1x1x8x128xi32>
    %130 = vector.broadcast %111 : vector<1x1x1x1xi32> to vector<1x1x8x128xi32>
    %131 = arith.cmpi sgt, %125, %130 : vector<1x1x8x128xi32>
    %132 = arith.andi %129, %131 : vector<1x1x8x128xi1>
    %133 = arith.ori %127, %132 : vector<1x1x8x128xi1>
    %c-1_i32_44 = arith.constant -1 : i32
    %134 = vector.broadcast %c-1_i32_44 : i32 to vector<1x1x8x128xi32>
    %135 = arith.select %133, %118, %134 : vector<1x1x8x128xi1>, vector<1x1x8x128xi32>
    %cst_45 = arith.constant dense<-2147483648> : vector<1x1xi32>
    %136 = vector.multi_reduction <maxsi>, %135, %cst_45 [2, 3] : vector<1x1x8x128xi32> to vector<1x1xi32>
    %137 = vector.shape_cast %136 : vector<1x1xi32> to vector<1x1x1x1xi32>
    %138 = vector.broadcast %137 : vector<1x1x1x1xi32> to vector<1x1x8x128xi32>
    %139 = arith.cmpi eq, %135, %138 : vector<1x1x8x128xi32>
    %c2147483647_i32_46 = arith.constant 2147483647 : i32
    %140 = vector.broadcast %c2147483647_i32_46 : i32 to vector<1x1x8x128xi32>
    %141 = arith.select %139, %125, %140 : vector<1x1x8x128xi1>, vector<1x1x8x128xi32>
    %cst_47 = arith.constant dense<2147483647> : vector<1x1xi32>
    %142 = vector.multi_reduction <minsi>, %141, %cst_47 [2, 3] : vector<1x1x8x128xi32> to vector<1x1xi32>
    %143 = vector.shape_cast %142 : vector<1x1xi32> to vector<1x1x1x1xi32>
    %144 = arith.cmpi sgt, %137, %113 : vector<1x1x1x1xi32>
    %145 = arith.cmpi eq, %137, %113 : vector<1x1x1x1xi32>
    %146 = arith.minsi %114, %143 : vector<1x1x1x1xi32>
    %147 = arith.select %145, %146, %114 : vector<1x1x1x1xi1>, vector<1x1x1x1xi32>
    %148 = arith.select %144, %143, %147 : vector<1x1x1x1xi1>, vector<1x1x1x1xi32>
    %149 = arith.maxsi %113, %137 : vector<1x1x1x1xi32>
    %c-1_i32_48 = arith.constant -1 : i32
    %150 = vector.broadcast %c-1_i32_48 : i32 to vector<1x1x1x1xi32>
    %c2147483647_i32_49 = arith.constant 2147483647 : i32
    %151 = vector.broadcast %c2147483647_i32_49 : i32 to vector<1x1x1x1xi32>
    %c0_50 = arith.constant 0 : index
    %c0_51 = arith.constant 0 : index
    %c0_52 = arith.constant 0 : index
    %c0_53 = arith.constant 0 : index
    %152 = vector.load %arg1[%c0_50, %c0_51, %c0_52, %c0_53] : memref<1x1x8x128xf32, #tpu.memory_space<vmem>>, vector<1x1x8x128xf32>
    %153 = tpu.bitcast %152 : vector<1x1x8x128xf32> -> vector<1x1x8x128xi32>
    %c2147483647_i32_54 = arith.constant 2147483647 : i32
    %154 = vector.broadcast %c2147483647_i32_54 : i32 to vector<1x1x8x128xi32>
    %155 = arith.andi %153, %154 : vector<1x1x8x128xi32>
    %156 = tpu.iota {dimensions = array<i32: 2>} : vector<1x1x8x128xi32>
    %157 = tpu.iota {dimensions = array<i32: 3>} : vector<1x1x8x128xi32>
    %c128_i32_55 = arith.constant 128 : i32
    %158 = vector.broadcast %c128_i32_55 : i32 to vector<1x1x8x128xi32>
    %159 = arith.muli %156, %158 : vector<1x1x8x128xi32>
    %c0_i32_56 = arith.constant 0 : i32
    %160 = vector.broadcast %c0_i32_56 : i32 to vector<1x1x8x128xi32>
    %161 = arith.addi %160, %159 : vector<1x1x8x128xi32>
    %162 = arith.addi %161, %157 : vector<1x1x8x128xi32>
    %163 = vector.broadcast %149 : vector<1x1x1x1xi32> to vector<1x1x8x128xi32>
    %164 = arith.cmpi slt, %155, %163 : vector<1x1x8x128xi32>
    %165 = vector.broadcast %149 : vector<1x1x1x1xi32> to vector<1x1x8x128xi32>
    %166 = arith.cmpi eq, %155, %165 : vector<1x1x8x128xi32>
    %167 = vector.broadcast %148 : vector<1x1x1x1xi32> to vector<1x1x8x128xi32>
    %168 = arith.cmpi sgt, %162, %167 : vector<1x1x8x128xi32>
    %169 = arith.andi %166, %168 : vector<1x1x8x128xi1>
    %170 = arith.ori %164, %169 : vector<1x1x8x128xi1>
    %c-1_i32_57 = arith.constant -1 : i32
    %171 = vector.broadcast %c-1_i32_57 : i32 to vector<1x1x8x128xi32>
    %172 = arith.select %170, %155, %171 : vector<1x1x8x128xi1>, vector<1x1x8x128xi32>
    %cst_58 = arith.constant dense<-2147483648> : vector<1x1xi32>
    %173 = vector.multi_reduction <maxsi>, %172, %cst_58 [2, 3] : vector<1x1x8x128xi32> to vector<1x1xi32>
    %174 = vector.shape_cast %173 : vector<1x1xi32> to vector<1x1x1x1xi32>
    %175 = vector.broadcast %174 : vector<1x1x1x1xi32> to vector<1x1x8x128xi32>
    %176 = arith.cmpi eq, %172, %175 : vector<1x1x8x128xi32>
    %c2147483647_i32_59 = arith.constant 2147483647 : i32
    %177 = vector.broadcast %c2147483647_i32_59 : i32 to vector<1x1x8x128xi32>
    %178 = arith.select %176, %162, %177 : vector<1x1x8x128xi1>, vector<1x1x8x128xi32>
    %cst_60 = arith.constant dense<2147483647> : vector<1x1xi32>
    %179 = vector.multi_reduction <minsi>, %178, %cst_60 [2, 3] : vector<1x1x8x128xi32> to vector<1x1xi32>
    %180 = vector.shape_cast %179 : vector<1x1xi32> to vector<1x1x1x1xi32>
    %181 = arith.cmpi sgt, %174, %150 : vector<1x1x1x1xi32>
    %182 = arith.cmpi eq, %174, %150 : vector<1x1x1x1xi32>
    %183 = arith.minsi %151, %180 : vector<1x1x1x1xi32>
    %184 = arith.select %182, %183, %151 : vector<1x1x1x1xi1>, vector<1x1x1x1xi32>
    %185 = arith.select %181, %180, %184 : vector<1x1x1x1xi1>, vector<1x1x1x1xi32>
    %186 = arith.maxsi %150, %174 : vector<1x1x1x1xi32>
    %c-1_i32_61 = arith.constant -1 : i32
    %187 = vector.broadcast %c-1_i32_61 : i32 to vector<1x1x1x1xi32>
    %c2147483647_i32_62 = arith.constant 2147483647 : i32
    %188 = vector.broadcast %c2147483647_i32_62 : i32 to vector<1x1x1x1xi32>
    %c0_63 = arith.constant 0 : index
    %c0_64 = arith.constant 0 : index
    %c0_65 = arith.constant 0 : index
    %c0_66 = arith.constant 0 : index
    %189 = vector.load %arg1[%c0_63, %c0_64, %c0_65, %c0_66] : memref<1x1x8x128xf32, #tpu.memory_space<vmem>>, vector<1x1x8x128xf32>
    %190 = tpu.bitcast %189 : vector<1x1x8x128xf32> -> vector<1x1x8x128xi32>
    %c2147483647_i32_67 = arith.constant 2147483647 : i32
    %191 = vector.broadcast %c2147483647_i32_67 : i32 to vector<1x1x8x128xi32>
    %192 = arith.andi %190, %191 : vector<1x1x8x128xi32>
    %193 = tpu.iota {dimensions = array<i32: 2>} : vector<1x1x8x128xi32>
    %194 = tpu.iota {dimensions = array<i32: 3>} : vector<1x1x8x128xi32>
    %c128_i32_68 = arith.constant 128 : i32
    %195 = vector.broadcast %c128_i32_68 : i32 to vector<1x1x8x128xi32>
    %196 = arith.muli %193, %195 : vector<1x1x8x128xi32>
    %c0_i32_69 = arith.constant 0 : i32
    %197 = vector.broadcast %c0_i32_69 : i32 to vector<1x1x8x128xi32>
    %198 = arith.addi %197, %196 : vector<1x1x8x128xi32>
    %199 = arith.addi %198, %194 : vector<1x1x8x128xi32>
    %200 = vector.broadcast %186 : vector<1x1x1x1xi32> to vector<1x1x8x128xi32>
    %201 = arith.cmpi slt, %192, %200 : vector<1x1x8x128xi32>
    %202 = vector.broadcast %186 : vector<1x1x1x1xi32> to vector<1x1x8x128xi32>
    %203 = arith.cmpi eq, %192, %202 : vector<1x1x8x128xi32>
    %204 = vector.broadcast %185 : vector<1x1x1x1xi32> to vector<1x1x8x128xi32>
    %205 = arith.cmpi sgt, %199, %204 : vector<1x1x8x128xi32>
    %206 = arith.andi %203, %205 : vector<1x1x8x128xi1>
    %207 = arith.ori %201, %206 : vector<1x1x8x128xi1>
    %c-1_i32_70 = arith.constant -1 : i32
    %208 = vector.broadcast %c-1_i32_70 : i32 to vector<1x1x8x128xi32>
    %209 = arith.select %207, %192, %208 : vector<1x1x8x128xi1>, vector<1x1x8x128xi32>
    %cst_71 = arith.constant dense<-2147483648> : vector<1x1xi32>
    %210 = vector.multi_reduction <maxsi>, %209, %cst_71 [2, 3] : vector<1x1x8x128xi32> to vector<1x1xi32>
    %211 = vector.shape_cast %210 : vector<1x1xi32> to vector<1x1x1x1xi32>
    %212 = vector.broadcast %211 : vector<1x1x1x1xi32> to vector<1x1x8x128xi32>
    %213 = arith.cmpi eq, %209, %212 : vector<1x1x8x128xi32>
    %c2147483647_i32_72 = arith.constant 2147483647 : i32
    %214 = vector.broadcast %c2147483647_i32_72 : i32 to vector<1x1x8x128xi32>
    %215 = arith.select %213, %199, %214 : vector<1x1x8x128xi1>, vector<1x1x8x128xi32>
    %cst_73 = arith.constant dense<2147483647> : vector<1x1xi32>
    %216 = vector.multi_reduction <minsi>, %215, %cst_73 [2, 3] : vector<1x1x8x128xi32> to vector<1x1xi32>
    %217 = vector.shape_cast %216 : vector<1x1xi32> to vector<1x1x1x1xi32>
    %218 = arith.cmpi sgt, %211, %187 : vector<1x1x1x1xi32>
    %219 = arith.cmpi eq, %211, %187 : vector<1x1x1x1xi32>
    %220 = arith.minsi %188, %217 : vector<1x1x1x1xi32>
    %221 = arith.select %219, %220, %188 : vector<1x1x1x1xi1>, vector<1x1x1x1xi32>
    %222 = arith.select %218, %217, %221 : vector<1x1x1x1xi1>, vector<1x1x1x1xi32>
    %223 = arith.maxsi %187, %211 : vector<1x1x1x1xi32>
    %c-1_i32_74 = arith.constant -1 : i32
    %224 = vector.broadcast %c-1_i32_74 : i32 to vector<1x1x1x1xi32>
    %c2147483647_i32_75 = arith.constant 2147483647 : i32
    %225 = vector.broadcast %c2147483647_i32_75 : i32 to vector<1x1x1x1xi32>
    %c0_76 = arith.constant 0 : index
    %c0_77 = arith.constant 0 : index
    %c0_78 = arith.constant 0 : index
    %c0_79 = arith.constant 0 : index
    %226 = vector.load %arg1[%c0_76, %c0_77, %c0_78, %c0_79] : memref<1x1x8x128xf32, #tpu.memory_space<vmem>>, vector<1x1x8x128xf32>
    %227 = tpu.bitcast %226 : vector<1x1x8x128xf32> -> vector<1x1x8x128xi32>
    %c2147483647_i32_80 = arith.constant 2147483647 : i32
    %228 = vector.broadcast %c2147483647_i32_80 : i32 to vector<1x1x8x128xi32>
    %229 = arith.andi %227, %228 : vector<1x1x8x128xi32>
    %230 = tpu.iota {dimensions = array<i32: 2>} : vector<1x1x8x128xi32>
    %231 = tpu.iota {dimensions = array<i32: 3>} : vector<1x1x8x128xi32>
    %c128_i32_81 = arith.constant 128 : i32
    %232 = vector.broadcast %c128_i32_81 : i32 to vector<1x1x8x128xi32>
    %233 = arith.muli %230, %232 : vector<1x1x8x128xi32>
    %c0_i32_82 = arith.constant 0 : i32
    %234 = vector.broadcast %c0_i32_82 : i32 to vector<1x1x8x128xi32>
    %235 = arith.addi %234, %233 : vector<1x1x8x128xi32>
    %236 = arith.addi %235, %231 : vector<1x1x8x128xi32>
    %237 = vector.broadcast %223 : vector<1x1x1x1xi32> to vector<1x1x8x128xi32>
    %238 = arith.cmpi slt, %229, %237 : vector<1x1x8x128xi32>
    %239 = vector.broadcast %223 : vector<1x1x1x1xi32> to vector<1x1x8x128xi32>
    %240 = arith.cmpi eq, %229, %239 : vector<1x1x8x128xi32>
    %241 = vector.broadcast %222 : vector<1x1x1x1xi32> to vector<1x1x8x128xi32>
    %242 = arith.cmpi sgt, %236, %241 : vector<1x1x8x128xi32>
    %243 = arith.andi %240, %242 : vector<1x1x8x128xi1>
    %244 = arith.ori %238, %243 : vector<1x1x8x128xi1>
    %c-1_i32_83 = arith.constant -1 : i32
    %245 = vector.broadcast %c-1_i32_83 : i32 to vector<1x1x8x128xi32>
    %246 = arith.select %244, %229, %245 : vector<1x1x8x128xi1>, vector<1x1x8x128xi32>
    %cst_84 = arith.constant dense<-2147483648> : vector<1x1xi32>
    %247 = vector.multi_reduction <maxsi>, %246, %cst_84 [2, 3] : vector<1x1x8x128xi32> to vector<1x1xi32>
    %248 = vector.shape_cast %247 : vector<1x1xi32> to vector<1x1x1x1xi32>
    %249 = vector.broadcast %248 : vector<1x1x1x1xi32> to vector<1x1x8x128xi32>
    %250 = arith.cmpi eq, %246, %249 : vector<1x1x8x128xi32>
    %c2147483647_i32_85 = arith.constant 2147483647 : i32
    %251 = vector.broadcast %c2147483647_i32_85 : i32 to vector<1x1x8x128xi32>
    %252 = arith.select %250, %236, %251 : vector<1x1x8x128xi1>, vector<1x1x8x128xi32>
    %cst_86 = arith.constant dense<2147483647> : vector<1x1xi32>
    %253 = vector.multi_reduction <minsi>, %252, %cst_86 [2, 3] : vector<1x1x8x128xi32> to vector<1x1xi32>
    %254 = vector.shape_cast %253 : vector<1x1xi32> to vector<1x1x1x1xi32>
    %255 = arith.cmpi sgt, %248, %224 : vector<1x1x1x1xi32>
    %256 = arith.cmpi eq, %248, %224 : vector<1x1x1x1xi32>
    %257 = arith.minsi %225, %254 : vector<1x1x1x1xi32>
    %258 = arith.select %256, %257, %225 : vector<1x1x1x1xi1>, vector<1x1x1x1xi32>
    %259 = arith.select %255, %254, %258 : vector<1x1x1x1xi1>, vector<1x1x1x1xi32>
    %260 = arith.maxsi %224, %248 : vector<1x1x1x1xi32>
    %c-1_i32_87 = arith.constant -1 : i32
    %261 = vector.broadcast %c-1_i32_87 : i32 to vector<1x1x1x1xi32>
    %c2147483647_i32_88 = arith.constant 2147483647 : i32
    %262 = vector.broadcast %c2147483647_i32_88 : i32 to vector<1x1x1x1xi32>
    %c0_89 = arith.constant 0 : index
    %c0_90 = arith.constant 0 : index
    %c0_91 = arith.constant 0 : index
    %c0_92 = arith.constant 0 : index
    %263 = vector.load %arg1[%c0_89, %c0_90, %c0_91, %c0_92] : memref<1x1x8x128xf32, #tpu.memory_space<vmem>>, vector<1x1x8x128xf32>
    %264 = tpu.bitcast %263 : vector<1x1x8x128xf32> -> vector<1x1x8x128xi32>
    %c2147483647_i32_93 = arith.constant 2147483647 : i32
    %265 = vector.broadcast %c2147483647_i32_93 : i32 to vector<1x1x8x128xi32>
    %266 = arith.andi %264, %265 : vector<1x1x8x128xi32>
    %267 = tpu.iota {dimensions = array<i32: 2>} : vector<1x1x8x128xi32>
    %268 = tpu.iota {dimensions = array<i32: 3>} : vector<1x1x8x128xi32>
    %c128_i32_94 = arith.constant 128 : i32
    %269 = vector.broadcast %c128_i32_94 : i32 to vector<1x1x8x128xi32>
    %270 = arith.muli %267, %269 : vector<1x1x8x128xi32>
    %c0_i32_95 = arith.constant 0 : i32
    %271 = vector.broadcast %c0_i32_95 : i32 to vector<1x1x8x128xi32>
    %272 = arith.addi %271, %270 : vector<1x1x8x128xi32>
    %273 = arith.addi %272, %268 : vector<1x1x8x128xi32>
    %274 = vector.broadcast %260 : vector<1x1x1x1xi32> to vector<1x1x8x128xi32>
    %275 = arith.cmpi slt, %266, %274 : vector<1x1x8x128xi32>
    %276 = vector.broadcast %260 : vector<1x1x1x1xi32> to vector<1x1x8x128xi32>
    %277 = arith.cmpi eq, %266, %276 : vector<1x1x8x128xi32>
    %278 = vector.broadcast %259 : vector<1x1x1x1xi32> to vector<1x1x8x128xi32>
    %279 = arith.cmpi sgt, %273, %278 : vector<1x1x8x128xi32>
    %280 = arith.andi %277, %279 : vector<1x1x8x128xi1>
    %281 = arith.ori %275, %280 : vector<1x1x8x128xi1>
    %c-1_i32_96 = arith.constant -1 : i32
    %282 = vector.broadcast %c-1_i32_96 : i32 to vector<1x1x8x128xi32>
    %283 = arith.select %281, %266, %282 : vector<1x1x8x128xi1>, vector<1x1x8x128xi32>
    %cst_97 = arith.constant dense<-2147483648> : vector<1x1xi32>
    %284 = vector.multi_reduction <maxsi>, %283, %cst_97 [2, 3] : vector<1x1x8x128xi32> to vector<1x1xi32>
    %285 = vector.shape_cast %284 : vector<1x1xi32> to vector<1x1x1x1xi32>
    %286 = vector.broadcast %285 : vector<1x1x1x1xi32> to vector<1x1x8x128xi32>
    %287 = arith.cmpi eq, %283, %286 : vector<1x1x8x128xi32>
    %c2147483647_i32_98 = arith.constant 2147483647 : i32
    %288 = vector.broadcast %c2147483647_i32_98 : i32 to vector<1x1x8x128xi32>
    %289 = arith.select %287, %273, %288 : vector<1x1x8x128xi1>, vector<1x1x8x128xi32>
    %cst_99 = arith.constant dense<2147483647> : vector<1x1xi32>
    %290 = vector.multi_reduction <minsi>, %289, %cst_99 [2, 3] : vector<1x1x8x128xi32> to vector<1x1xi32>
    %291 = vector.shape_cast %290 : vector<1x1xi32> to vector<1x1x1x1xi32>
    %292 = arith.cmpi sgt, %285, %261 : vector<1x1x1x1xi32>
    %293 = arith.cmpi eq, %285, %261 : vector<1x1x1x1xi32>
    %294 = arith.minsi %262, %291 : vector<1x1x1x1xi32>
    %295 = arith.select %293, %294, %262 : vector<1x1x1x1xi1>, vector<1x1x1x1xi32>
    %296 = arith.select %292, %291, %295 : vector<1x1x1x1xi1>, vector<1x1x1x1xi32>
    %297 = arith.maxsi %261, %285 : vector<1x1x1x1xi32>
    %c1_i32 = arith.constant 1 : i32
    %298 = vector.broadcast %c1_i32 : i32 to vector<1x1x1x1xi32>
    %299 = arith.addi %296, %298 : vector<1x1x1x1xi32>
    %c0_100 = arith.constant 0 : index
    %c0_101 = arith.constant 0 : index
    %c0_102 = arith.constant 0 : index
    %c0_103 = arith.constant 0 : index
    %300 = vector.load %arg1[%c0_100, %c0_101, %c0_102, %c0_103] : memref<1x1x8x128xf32, #tpu.memory_space<vmem>>, vector<1x1x8x128xf32>
    %301 = tpu.bitcast %300 : vector<1x1x8x128xf32> -> vector<1x1x8x128xi32>
    %c2147483647_i32_104 = arith.constant 2147483647 : i32
    %302 = vector.broadcast %c2147483647_i32_104 : i32 to vector<1x1x8x128xi32>
    %303 = arith.andi %301, %302 : vector<1x1x8x128xi32>
    %304 = tpu.iota {dimensions = array<i32: 2>} : vector<1x1x8x128xi32>
    %305 = tpu.iota {dimensions = array<i32: 3>} : vector<1x1x8x128xi32>
    %c128_i32_105 = arith.constant 128 : i32
    %306 = vector.broadcast %c128_i32_105 : i32 to vector<1x1x8x128xi32>
    %307 = arith.muli %304, %306 : vector<1x1x8x128xi32>
    %c0_i32_106 = arith.constant 0 : i32
    %308 = vector.broadcast %c0_i32_106 : i32 to vector<1x1x8x128xi32>
    %309 = arith.addi %308, %307 : vector<1x1x8x128xi32>
    %310 = arith.addi %309, %305 : vector<1x1x8x128xi32>
    %311 = vector.broadcast %297 : vector<1x1x1x1xi32> to vector<1x1x8x128xi32>
    %312 = arith.cmpi sgt, %303, %311 : vector<1x1x8x128xi32>
    %313 = vector.broadcast %297 : vector<1x1x1x1xi32> to vector<1x1x8x128xi32>
    %314 = arith.cmpi eq, %303, %313 : vector<1x1x8x128xi32>
    %315 = vector.broadcast %299 : vector<1x1x1x1xi32> to vector<1x1x8x128xi32>
    %316 = arith.cmpi slt, %310, %315 : vector<1x1x8x128xi32>
    %317 = arith.andi %314, %316 : vector<1x1x8x128xi1>
    %318 = arith.ori %312, %317 : vector<1x1x8x128xi1>
    %cst_107 = arith.constant 0.000000e+00 : f32
    %319 = vector.broadcast %cst_107 : f32 to vector<1x1x8x128xf32>
    %320 = arith.select %318, %300, %319 : vector<1x1x8x128xi1>, vector<1x1x8x128xf32>
    %c0_108 = arith.constant 0 : index
    %c0_109 = arith.constant 0 : index
    %c0_110 = arith.constant 0 : index
    %c0_111 = arith.constant 0 : index
    %321 = vector.load %arg2[%c0_108, %c0_109, %c0_110, %c0_111] : memref<1x1x8x128xf32, #tpu.memory_space<vmem>>, vector<1x1x8x128xf32>
    tpu.vector_store %arg2[%c0_108, %c0_109, %c0_110, %c0_111], %320 {strides = array<i32>} : memref<1x1x8x128xf32, #tpu.memory_space<vmem>>, vector<1x1x8x128xf32>,
    return
  }
  func.func @transform_0(%arg0: i32) -> (i32, i32, i32, i32) {
    %c0_i32 = arith.constant 0 : i32
    %c0_i32_0 = arith.constant 0 : i32
    %c0_i32_1 = arith.constant 0 : i32
    %c0_i32_2 = arith.constant 0 : i32
    return %arg0, %c0_i32, %c0_i32_0, %c0_i32_1 : i32, i32, i32, i32
  }
  func.func @transform_1(%arg0: i32) -> (i32, i32, i32, i32) {
    %c0_i32 = arith.constant 0 : i32
    %c0_i32_0 = arith.constant 0 : i32
    %c0_i32_1 = arith.constant 0 : i32
    %c0_i32_2 = arith.constant 0 : i32
    return %arg0, %c0_i32, %c0_i32_0, %c0_i32_1 : i32, i32, i32, i32
  }
}

</mosaic_0001>

<bundles_post_ra>
// kernel: tpu_custom_call.1
= control target key start
LH: loop header
LB: loop body
LE: loop exit
PB: predicated region body
PF: predicated region fallthrough
CT: control target
= control target key end

     0   :  { %6 = vsyncpa [#allocation3], 0  ;;  %s1097_s0 = inlined_call_operand.hbm [shape: f32[2,1,8,128], index: 0, kind: input, shape index: {}, may-alias: {0,1}]   ;;  %s1098_s1 = inlined_call_operand.hbm [shape: f32[2,1,8,128], index: 1, kind: output, shape index: {}, may-alias: {0,1}]  }
   0x1   :  { %8 = vsyncpa [#allocation3 + $0x1], 0 }
   0x2   :  { %9 = vsyncpa [#allocation4], 0 }
   0x3   :  { %11 = vsyncpa [#allocation4 + $0x1], 0  ;;  %s881_s6 = smov 0   ;;  %s883_s7 = smov 0  }
   0x4   :  { %s885_s8 = smov 0   ;;  %s887_s9 = smov 0  }
   0x5 LB: > { %s902_s10 = sadd.s32 4294967295, %s867_s9   ;;  %s713_s11 = sadd.s32 4294967294, %s867_s9   ;;  %s867_s9 = sphi %s887_s9, %s1113_s9   ;;  %s863_s8 = sphi %s885_s8, %s1112_s8   ;;  %s859_s7 = sphi %s883_s7, %s1111_s7   ;;  %s855_s6 = sphi %s881_s6, %s1110_s6  }
   0x6   : > { %s906_s12 = sadd.s32 1, %s867_s9   ;;  %s24_s13 = sadd.s32 1, %s863_s8 }
   0x7   : > { %s21_s14 = ssub.s32 %s867_s9, %s906_s12  ;;  %p31_p0 = scmp.ne.s32.totalorder %s863_s8, %s859_s7 }
   0x8   : > { %p22_p1 = scmp.eq.s32.totalorder %s21_s14, 0  ;;  %p32_p2 = scmp.eq.s32.totalorder %s867_s9, 0 }
   0x9   : > { %p37_p3 = scmp.ne.s32.totalorder %s859_s7, %s855_s6  ;;  %p38_p4 = scmp.eq.s32.totalorder %s902_s10, 0 }
   0xa   : > { %s918_s15 = scalar_select %p22_p1, %s863_s8, %s24_s13  }
   0xb   : > { %p920_p5 = por %p32_p2, %p31_p0  ;;  %p924_p6 = por %p38_p4, %p37_p3 }
   0xc   : > { %p61_p7 = scmp.eq.s32.totalorder %s902_s10, 1  ;;  %p67_p8 = scmp.eq.s32.totalorder %s713_s11, 1 }
   0xd   : > { %p737_p10 = scmp.lt.s32.totalorder %s867_s9, 2  ;;  %s87_s20 = sand.u32 1, %s863_s8  }
   0xe   : > { %p931_p11 = por %p61_p7, %p31_p0  ;;  %p935_p12 = por %p67_p8, %p37_p3 }
   0xf   : > { %s717_s21 = sshll.u32 %s867_s9, 7  ;;  %s716_s22 = sshll.u32 %s87_s20, 3 }
  0x10   : > { %s1102_s18 = scalar_select %p931_p11, 1, 0 }
  0x11   : > { %s1103_s19 = scalar_select %p935_p12, 1, 0 }
  0x12   : > { %s944_s25 = scalar_lea.hbm %s1097_s0, %s717_s21  ;;  %s91_s26 = scalar_lea.vmem [#allocation2], %s716_s22 }
  0x13   : > { %s98_s27 = sshll.u32 %s91_s26, 4  ;;  %p948_p13 = pnand %p737_p10, %p920_p5  ;;  %s952_s27 = int_to_ptr.vmem [resolvable:$true] %s98_s27 }
  0x14   : > { %s88_s29 = scalar_lea.sflag [#allocation3], %s87_s20  ;;  %s771_s30 = scalar_lea.hbm %s944_s25, 128 }
  0x15   : > { %p772_p2 = scmp.ne.s32.totalorder %s944_s25, %s771_s30  ;;  %p773_p3 = pneg %p948_p13 }
  0x16   : > { %s776_s4 = scalar_lea.hbm %s1097_s0, 256  ;;  %p777_p5 = scmp.lt.u32.totalorder %s944_s25, %s1097_s0 }
  0x17   : > { %p774_p4 = pnand %p773_p3, %p772_p2  ;;  %p778_p8 = scmp.lt.u32.totalorder %s776_s4, %s771_s30 }
  0x18   : > { %p780_p9 = scmp.lt.u32.totalorder %s771_s30, %s944_s25 }
  0x19   : > { %p775_p7 = pneg %p774_p4  ;;  %p779_p10 = por %p778_p8, %p777_p5 }
  0x1b   : > { %p781_p0 = por %p780_p9, %p779_p10 }
  0x1d   : > { %p782_p1 = pnand %p781_p0, %p775_p7 }
  0x1f   : > { %785 = shalt.err (!%p782_p1)
}
  0x20   : > { %s786_s13 = scalar_lea.vmem %s952_s27, 128  ;;  %s869_s14 = smov [#allocation2]  }
  0x21   : > { %p787_p2 = scmp.ne.s32.totalorder %s952_s27, %s786_s13  ;;  %s791_s16 = sshll.u32 %s869_s14, 4  ;;  %s792_s16 = int_to_ptr.vmem [resolvable:$false] %s791_s16 }
  0x22   : > { %s793_s20 = scalar_lea.vmem %s792_s16, 256  ;;  %p794_p11 = scmp.lt.s32.totalorder %s952_s27, %s792_s16 }
  0x23   : > { %p789_p4 = pnand %p787_p2, %p773_p3  ;;  %p795_p5 = scmp.lt.s32.totalorder %s793_s20, %s786_s13 }
  0x25   : > { %p790_p12 = pneg %p789_p4  ;;  %p796_p8 = por %p795_p5, %p794_p11 }
  0x27   : > { %p797_p9 = pnand %p796_p8, %p790_p12 }
  0x29   : > { %800 = shalt.err (!%p797_p9)
}
  0x2a   : > { %732 = dma.hbm_to_vmem [thread:$0]  (!%p948_p13), %s944_s25, 128, %s952_s27, %s88_s29  }
  0x2b   : > { %p1105_p0 = scmp.lt.s32.totalorder %s867_s9, 3  ;;  %p1106_p1 = scmp.ge.s32.totalorder %s867_s9, 1 }
  0x2d   : > { %p104_p3 = pnand %p1106_p1, %p1105_p0 }
  0x2e   : > { %s986_s21 = sand.u32 (!%p104_p3), 1, %s859_s7  }
  0x2f   : > { %107 = sbr.rel (%p104_p3) target bundleno = 5043 (0x13b3), region = 24  ;;  %s719_s22 = sshll.u32 (!%p104_p3), %s986_s21, 3 }
  0x30   : > { %s110_s23 = scalar_lea.sflag (!%p104_p3), [#allocation3], %s986_s21  ;;  %s113_s24 = scalar_lea.vmem (!%p104_p3), [#allocation2], %s719_s22 }
  0x36   : > { %846 = dma.done.wait (%p924_p6), %s110_s23, 128  }
  0x37   : > { %848 = vsyncadd (%p924_p6), %s110_s23, 4294967168  ;;  %v135_v0 = vlaneseq  ;;  %v998_v5 = vld [vmem:[%s113_s24] sm:$0xff]  ;;  %s722_s17 = sshll.u32 %s902_s10, 7  ;;  %s131_s25 = scalar_lea.vmem [#allocation5], %s719_s22 }
  0x38   : > { %v1001_v6 = vand.u32 2147483647, %v998_v5  ;;  %s643_s26 = sshll.u32 %s131_s25, 4  ;;  %s1052_s29 = scalar_lea.hbm %s1098_s1, %s722_s17  ;;  %s1054_s26 = int_to_ptr.vmem [resolvable:$true] %s643_s26 }
  0x39   : > { %v136_v1 = vshrl.u32 %v135_v0, 7  ;;  %v138_v2 = vand.u32 127, %v135_v0  ;;  %s630_s10 = scalar_lea.sflag [#allocation4], %s986_s21  ;;  %s801_s30 = scalar_lea.vmem %s1054_s26, 128 }
  0x3a   : > { %vm141_vm1 = vcmp.lt.s32.totalorder %v1001_v6, 2147483647  ;;  %vm142_vm2 = vcmp.eq.s32.totalorder %v1001_v6, 2147483647  ;;  %p802_p6 = scmp.ne.s32.totalorder %s1054_s26, %s801_s30  ;;  %p1107_p11 = scmp.ne.s32.totalorder %s1102_s18, 0 }
  0x3b   : > { %v139_v3 = vmul.u32 128, %v136_v1  ;;  %s870_s2 = smov [#allocation5]  }
  0x3c   : > { %p803_p12 = pnand %p802_p6, %p1107_p11  ;;  %s805_s3 = sshll.u32 %s870_s2, 4  ;;  %s806_s3 = int_to_ptr.vmem [resolvable:$false] %s805_s3 }
  0x3d   : > { %v996_v4 = vadd.s32 %v139_v3, %v138_v2  ;;  %s807_s4 = scalar_lea.vmem %s806_s3, 256  ;;  %p808_p7 = scmp.lt.s32.totalorder %s1054_s26, %s806_s3 }
  0x3e   : > { %p804_p13 = pneg %p803_p12  ;;  %p809_p10 = scmp.lt.s32.totalorder %s807_s4, %s801_s30 }
  0x3f   : > { %vm143_vm0 = vcmp.gt.s32.totalorder %v996_v4, 4294967295 }
  0x40   : > { %vm144_vm3 = vmand %vm142_vm2, %vm143_vm0  ;;  %p810_p2 = por %p809_p10, %p808_p7 }
  0x41   : > { %vm145_vm4 = vmor %vm141_vm1, %vm144_vm3 }
  0x42   : > { %v146_v7 = vsel %vm145_vm4, %v1001_v6, 4294967295  ;;  %p811_p4 = pnand %p810_p2, %p804_p13 }
  0x43   : > { %v148_v8 = vshra.s32 %v146_v7, 16  ;;  %v147_v10 = vand.u32 65535, %v146_v7 }
  0x45   : > { %v150_v9 = vcvt.s32.f32 %v148_v8  ;;  %v149_v11 = vcvt.s32.f32 %v147_v10 }
  0x47   : > { %151 = vmax.xlane.f32.xlu0 %v150_v9 }
  0xd4   : > { %v152_v12 = vpop.xlane.xlu0 %151 }
  0xd5   : > { %vm153_vm5 = vcmp.eq.f32.partialorder %v150_v9, %v152_v12  ;;  %v158_v14 = vcvt.f32.s32 %v152_v12 }
  0xd6   : > { %v154_v13 = vsel %vm153_vm5, %v149_v11, -inf }
  0xd7   : > { %155 = vmax.xlane.f32.xlu0 %v154_v13  ;;  %v159_v16 = vshll.u32 %v158_v14, 16 }
 0x164   : > { %v156_v15 = vpop.xlane.xlu0 %155 }
 0x165   : > { %v157_v17 = vcvt.f32.s32 %v156_v15 }
 0x167   : > { %v160_v18 = vadd.s32 %v159_v16, %v157_v17 }
 0x169   : > { %v161_v19 = vrot.slane %v160_v18, 4 }
 0x16b   : > { %vm162_vm6 = vcmp.gt.s32.totalorder %v160_v18, %v161_v19 }
 0x16c   : > { %v163_v20 = vsel %vm162_vm6, %v160_v18, %v161_v19 }
 0x16d   : > { %v164_v21 = vrot.slane %v163_v20, 2 }
 0x16f   : > { %vm165_vm7 = vcmp.gt.s32.totalorder %v163_v20, %v164_v21 }
 0x170   : > { %v166_v22 = vsel %vm165_vm7, %v163_v20, %v164_v21 }
 0x171   : > { %v167_v23 = vrot.slane %v166_v22, 1 }
 0x173   : > { %vm168_vm8 = vcmp.gt.s32.totalorder %v166_v22, %v167_v23 }
 0x174   : > { %v169_v24 = vsel %vm168_vm8, %v166_v22, %v167_v23 }
 0x175   : > { %vm170_vm9 = vcmp.eq.s32.totalorder %v146_v7, %v169_v24  ;;  %vm195_vm13 = vcmp.gt.s32.totalorder %v169_v24, 4294967295  ;;  %vm196_vm15 = vcmp.eq.s32.totalorder %v169_v24, 4294967295 }
 0x176   : > { %v171_v25 = vsel %vm170_vm9, %v996_v4, 2147483647  ;;  %v200_v43 = vsel %vm195_vm13, %v169_v24, 4294967295 }
 0x177   : > { %v173_v26 = vshra.s32 %v171_v25, 16  ;;  %v172_v28 = vand.u32 65535, %v171_v25  ;;  %vm202_vm0 = vcmp.eq.s32.totalorder %v1001_v6, %v200_v43  ;;  %vm201_vm2 = vcmp.lt.s32.totalorder %v1001_v6, %v200_v43 }
 0x179   : > { %v175_v27 = vcvt.s32.f32 %v173_v26  ;;  %v174_v30 = vcvt.s32.f32 %v172_v28 }
 0x17b   : > { %176 = vmin.xlane.f32.xlu1 %v175_v27 }
 0x208   : > { %v177_v29 = vpop.xlane.xlu1 %176 }
 0x209   : > { %vm178_vm10 = vcmp.eq.f32.partialorder %v175_v27, %v177_v29  ;;  %v183_v32 = vcvt.f32.s32 %v177_v29 }
 0x20a   : > { %v179_v31 = vsel %vm178_vm10, %v174_v30, inf }
 0x20b   : > { %180 = vmin.xlane.f32.xlu1 %v179_v31  ;;  %v184_v34 = vshll.u32 %v183_v32, 16 }
 0x298   : > { %v181_v33 = vpop.xlane.xlu1 %180 }
 0x299   : > { %v182_v35 = vcvt.f32.s32 %v181_v33 }
 0x29b   : > { %v185_v36 = vadd.s32 %v184_v34, %v182_v35 }
 0x29d   : > { %v186_v37 = vrot.slane %v185_v36, 4 }
 0x29f   : > { %vm187_vm11 = vcmp.lt.s32.totalorder %v185_v36, %v186_v37 }
 0x2a0   : > { %v188_v38 = vsel %vm187_vm11, %v185_v36, %v186_v37 }
 0x2a1   : > { %v189_v39 = vrot.slane %v188_v38, 2 }
 0x2a3   : > { %vm190_vm12 = vcmp.lt.s32.totalorder %v188_v38, %v189_v39 }
 0x2a4   : > { %v191_v40 = vsel %vm190_vm12, %v188_v38, %v189_v39 }
 0x2a5   : > { %v192_v41 = vrot.slane %v191_v40, 1 }
 0x2a7   : > { %vm193_vm14 = vcmp.lt.s32.totalorder %v191_v40, %v192_v41 }
 0x2a8   : > { %v194_v42 = vsel %vm193_vm14, %v191_v40, %v192_v41 }
 0x2a9   : > { %v197_v44 = vsel %vm196_vm15, %v194_v42, 2147483647 }
 0x2aa   : > { %v198_v45 = vsel %vm195_vm13, %v194_v42, %v197_v44 }
 0x2ab   : > { %vm203_vm1 = vcmp.gt.s32.totalorder %v996_v4, %v198_v45 }
 0x2ac   : > { %vm204_vm3 = vmand %vm202_vm0, %vm203_vm1 }
 0x2ad   : > { %vm205_vm4 = vmor %vm201_vm2, %vm204_vm3 }
 0x2ae   : > { %v206_v46 = vsel %vm205_vm4, %v1001_v6, 4294967295 }
 0x2af   : > { %v208_v47 = vshra.s32 %v206_v46, 16  ;;  %v207_v49 = vand.u32 65535, %v206_v46 }
 0x2b1   : > { %v210_v48 = vcvt.s32.f32 %v208_v47  ;;  %v209_v51 = vcvt.s32.f32 %v207_v49 }
 0x2b3   : > { %211 = vmax.xlane.f32.xlu0 %v210_v48 }
 0x340   : > { %v212_v50 = vpop.xlane.xlu0 %211 }
 0x341   : > { %vm213_vm5 = vcmp.eq.f32.partialorder %v210_v48, %v212_v50  ;;  %v218_v53 = vcvt.f32.s32 %v212_v50 }
 0x342   : > { %v214_v52 = vsel %vm213_vm5, %v209_v51, -inf }
 0x343   : > { %215 = vmax.xlane.f32.xlu1 %v214_v52  ;;  %v219_v55 = vshll.u32 %v218_v53, 16 }
 0x3d0   : > { %v216_v54 = vpop.xlane.xlu1 %215 }
 0x3d1   : > { %v217_v56 = vcvt.f32.s32 %v216_v54 }
 0x3d3   : > { %v220_v57 = vadd.s32 %v219_v55, %v217_v56 }
 0x3d5   : > { %v221_v58 = vrot.slane %v220_v57, 4 }
 0x3d7   : > { %vm222_vm6 = vcmp.gt.s32.totalorder %v220_v57, %v221_v58 }
 0x3d8   : > { %v223_v59 = vsel %vm222_vm6, %v220_v57, %v221_v58 }
 0x3d9   : > { %v224_v60 = vrot.slane %v223_v59, 2 }
 0x3db   : > { %vm225_vm7 = vcmp.gt.s32.totalorder %v223_v59, %v224_v60 }
 0x3dc   : > { %v226_v61 = vsel %vm225_vm7, %v223_v59, %v224_v60 }
 0x3dd   : > { %v227_v62 = vrot.slane %v226_v61, 1 }
 0x3df   : > { %vm228_vm8 = vcmp.gt.s32.totalorder %v226_v61, %v227_v62 }
 0x3e0   : > { %v229_v63 = vsel %vm228_vm8, %v226_v61, %v227_v62 }
 0x3e1   : > { %vm230_vm9 = vcmp.eq.s32.totalorder %v206_v46, %v229_v63  ;;  %vm255_vm13 = vcmp.gt.s32.totalorder %v229_v63, 4294967295  ;;  %vm256_vm15 = vcmp.eq.s32.totalorder %v229_v63, 4294967295 }
 0x3e2   : > { %v231_v0 = vsel %vm230_vm9, %v996_v4, 2147483647  ;;  %v260_v21 = vsel %vm255_vm13, %v229_v63, 4294967295 }
 0x3e3   : > { %v233_v1 = vshra.s32 %v231_v0, 16  ;;  %v232_v3 = vand.u32 65535, %v231_v0  ;;  %vm262_vm0 = vcmp.eq.s32.totalorder %v1001_v6, %v260_v21  ;;  %vm261_vm2 = vcmp.lt.s32.totalorder %v1001_v6, %v260_v21 }
 0x3e5   : > { %v235_v2 = vcvt.s32.f32 %v233_v1  ;;  %v234_v8 = vcvt.s32.f32 %v232_v3 }
 0x3e7   : > { %236 = vmin.xlane.f32.xlu0 %v235_v2 }
 0x474   : > { %v237_v7 = vpop.xlane.xlu0 %236 }
 0x475   : > { %vm238_vm10 = vcmp.eq.f32.partialorder %v235_v2, %v237_v7  ;;  %v243_v10 = vcvt.f32.s32 %v237_v7 }
 0x476   : > { %v239_v9 = vsel %vm238_vm10, %v234_v8, inf }
 0x477   : > { %240 = vmin.xlane.f32.xlu1 %v239_v9  ;;  %v244_v12 = vshll.u32 %v243_v10, 16 }
 0x504   : > { %v241_v11 = vpop.xlane.xlu1 %240 }
 0x505   : > { %v242_v13 = vcvt.f32.s32 %v241_v11 }
 0x507   : > { %v245_v14 = vadd.s32 %v244_v12, %v242_v13 }
 0x509   : > { %v246_v15 = vrot.slane %v245_v14, 4 }
 0x50b   : > { %vm247_vm11 = vcmp.lt.s32.totalorder %v245_v14, %v246_v15 }
 0x50c   : > { %v248_v16 = vsel %vm247_vm11, %v245_v14, %v246_v15 }
 0x50d   : > { %v249_v17 = vrot.slane %v248_v16, 2 }
 0x50f   : > { %vm250_vm12 = vcmp.lt.s32.totalorder %v248_v16, %v249_v17 }
 0x510   : > { %v251_v18 = vsel %vm250_vm12, %v248_v16, %v249_v17 }
 0x511   : > { %v252_v19 = vrot.slane %v251_v18, 1 }
 0x513   : > { %vm253_vm14 = vcmp.lt.s32.totalorder %v251_v18, %v252_v19 }
 0x514   : > { %v254_v20 = vsel %vm253_vm14, %v251_v18, %v252_v19 }
 0x515   : > { %v257_v22 = vsel %vm256_vm15, %v254_v20, 2147483647 }
 0x516   : > { %v258_v23 = vsel %vm255_vm13, %v254_v20, %v257_v22 }
 0x517   : > { %vm263_vm1 = vcmp.gt.s32.totalorder %v996_v4, %v258_v23 }
 0x518   : > { %vm264_vm3 = vmand %vm262_vm0, %vm263_vm1 }
 0x519   : > { %vm265_vm4 = vmor %vm261_vm2, %vm264_vm3 }
 0x51a   : > { %v266_v24 = vsel %vm265_vm4, %v1001_v6, 4294967295 }
 0x51b   : > { %v268_v25 = vshra.s32 %v266_v24, 16  ;;  %v267_v27 = vand.u32 65535, %v266_v24 }
 0x51d   : > { %v270_v26 = vcvt.s32.f32 %v268_v25  ;;  %v269_v29 = vcvt.s32.f32 %v267_v27 }
 0x51f   : > { %271 = vmax.xlane.f32.xlu0 %v270_v26 }
 0x5ac   : > { %v272_v28 = vpop.xlane.xlu0 %271 }
 0x5ad   : > { %vm273_vm5 = vcmp.eq.f32.partialorder %v270_v26, %v272_v28  ;;  %v278_v31 = vcvt.f32.s32 %v272_v28 }
 0x5ae   : > { %v274_v30 = vsel %vm273_vm5, %v269_v29, -inf }
 0x5af   : > { %275 = vmax.xlane.f32.xlu1 %v274_v30  ;;  %v279_v33 = vshll.u32 %v278_v31, 16 }
 0x63c   : > { %v276_v32 = vpop.xlane.xlu1 %275 }
 0x63d   : > { %v277_v34 = vcvt.f32.s32 %v276_v32 }
 0x63f   : > { %v280_v35 = vadd.s32 %v279_v33, %v277_v34 }
 0x641   : > { %v281_v36 = vrot.slane %v280_v35, 4 }
 0x643   : > { %vm282_vm6 = vcmp.gt.s32.totalorder %v280_v35, %v281_v36 }
 0x644   : > { %v283_v37 = vsel %vm282_vm6, %v280_v35, %v281_v36 }
 0x645   : > { %v284_v38 = vrot.slane %v283_v37, 2 }
 0x647   : > { %vm285_vm7 = vcmp.gt.s32.totalorder %v283_v37, %v284_v38 }
 0x648   : > { %v286_v39 = vsel %vm285_vm7, %v283_v37, %v284_v38 }
 0x649   : > { %v287_v40 = vrot.slane %v286_v39, 1 }
 0x64b   : > { %vm288_vm8 = vcmp.gt.s32.totalorder %v286_v39, %v287_v40 }
 0x64c   : > { %v289_v41 = vsel %vm288_vm8, %v286_v39, %v287_v40 }
 0x64d   : > { %vm290_vm9 = vcmp.eq.s32.totalorder %v266_v24, %v289_v41  ;;  %vm315_vm13 = vcmp.gt.s32.totalorder %v289_v41, 4294967295  ;;  %vm316_vm15 = vcmp.eq.s32.totalorder %v289_v41, 4294967295 }
 0x64e   : > { %v291_v42 = vsel %vm290_vm9, %v996_v4, 2147483647  ;;  %v320_v60 = vsel %vm315_vm13, %v289_v41, 4294967295 }
 0x64f   : > { %v293_v43 = vshra.s32 %v291_v42, 16  ;;  %v292_v45 = vand.u32 65535, %v291_v42  ;;  %vm322_vm0 = vcmp.eq.s32.totalorder %v1001_v6, %v320_v60  ;;  %vm321_vm2 = vcmp.lt.s32.totalorder %v1001_v6, %v320_v60 }
 0x651   : > { %v295_v44 = vcvt.s32.f32 %v293_v43  ;;  %v294_v47 = vcvt.s32.f32 %v292_v45 }
 0x653   : > { %296 = vmin.xlane.f32.xlu0 %v295_v44 }
 0x6e0   : > { %v297_v46 = vpop.xlane.xlu0 %296 }
 0x6e1   : > { %vm298_vm10 = vcmp.eq.f32.partialorder %v295_v44, %v297_v46  ;;  %v303_v49 = vcvt.f32.s32 %v297_v46 }
 0x6e2   : > { %v299_v48 = vsel %vm298_vm10, %v294_v47, inf }
 0x6e3   : > { %300 = vmin.xlane.f32.xlu1 %v299_v48  ;;  %v304_v51 = vshll.u32 %v303_v49, 16 }
 0x770   : > { %v301_v50 = vpop.xlane.xlu1 %300 }
 0x771   : > { %v302_v52 = vcvt.f32.s32 %v301_v50 }
 0x773   : > { %v305_v53 = vadd.s32 %v304_v51, %v302_v52 }
 0x775   : > { %v306_v54 = vrot.slane %v305_v53, 4 }
 0x777   : > { %vm307_vm11 = vcmp.lt.s32.totalorder %v305_v53, %v306_v54 }
 0x778   : > { %v308_v55 = vsel %vm307_vm11, %v305_v53, %v306_v54 }
 0x779   : > { %v309_v56 = vrot.slane %v308_v55, 2 }
 0x77b   : > { %vm310_vm12 = vcmp.lt.s32.totalorder %v308_v55, %v309_v56 }
 0x77c   : > { %v311_v57 = vsel %vm310_vm12, %v308_v55, %v309_v56 }
 0x77d   : > { %v312_v58 = vrot.slane %v311_v57, 1 }
 0x77f   : > { %vm313_vm14 = vcmp.lt.s32.totalorder %v311_v57, %v312_v58 }
 0x780   : > { %v314_v59 = vsel %vm313_vm14, %v311_v57, %v312_v58 }
 0x781   : > { %v317_v61 = vsel %vm316_vm15, %v314_v59, 2147483647 }
 0x782   : > { %v318_v62 = vsel %vm315_vm13, %v314_v59, %v317_v61 }
 0x783   : > { %vm323_vm1 = vcmp.gt.s32.totalorder %v996_v4, %v318_v62 }
 0x784   : > { %vm324_vm3 = vmand %vm322_vm0, %vm323_vm1 }
 0x785   : > { %vm325_vm4 = vmor %vm321_vm2, %vm324_vm3 }
 0x786   : > { %v326_v63 = vsel %vm325_vm4, %v1001_v6, 4294967295 }
 0x787   : > { %v328_v0 = vshra.s32 %v326_v63, 16  ;;  %v327_v2 = vand.u32 65535, %v326_v63 }
 0x789   : > { %v330_v1 = vcvt.s32.f32 %v328_v0  ;;  %v329_v7 = vcvt.s32.f32 %v327_v2 }
 0x78b   : > { %331 = vmax.xlane.f32.xlu0 %v330_v1 }
 0x818   : > { %v332_v3 = vpop.xlane.xlu0 %331 }
 0x819   : > { %vm333_vm5 = vcmp.eq.f32.partialorder %v330_v1, %v332_v3  ;;  %v338_v9 = vcvt.f32.s32 %v332_v3 }
 0x81a   : > { %v334_v8 = vsel %vm333_vm5, %v329_v7, -inf }
 0x81b   : > { %335 = vmax.xlane.f32.xlu1 %v334_v8  ;;  %v339_v11 = vshll.u32 %v338_v9, 16 }
 0x8a8   : > { %v336_v10 = vpop.xlane.xlu1 %335 }
 0x8a9   : > { %v337_v12 = vcvt.f32.s32 %v336_v10 }
 0x8ab   : > { %v340_v13 = vadd.s32 %v339_v11, %v337_v12 }
 0x8ad   : > { %v341_v14 = vrot.slane %v340_v13, 4 }
 0x8af   : > { %vm342_vm6 = vcmp.gt.s32.totalorder %v340_v13, %v341_v14 }
 0x8b0   : > { %v343_v15 = vsel %vm342_vm6, %v340_v13, %v341_v14 }
 0x8b1   : > { %v344_v16 = vrot.slane %v343_v15, 2 }
 0x8b3   : > { %vm345_vm7 = vcmp.gt.s32.totalorder %v343_v15, %v344_v16 }
 0x8b4   : > { %v346_v17 = vsel %vm345_vm7, %v343_v15, %v344_v16 }
 0x8b5   : > { %v347_v18 = vrot.slane %v346_v17, 1 }
 0x8b7   : > { %vm348_vm8 = vcmp.gt.s32.totalorder %v346_v17, %v347_v18 }
 0x8b8   : > { %v349_v19 = vsel %vm348_vm8, %v346_v17, %v347_v18 }
 0x8b9   : > { %vm350_vm9 = vcmp.eq.s32.totalorder %v326_v63, %v349_v19  ;;  %vm375_vm13 = vcmp.gt.s32.totalorder %v349_v19, 4294967295  ;;  %vm376_vm15 = vcmp.eq.s32.totalorder %v349_v19, 4294967295 }
 0x8ba   : > { %v351_v20 = vsel %vm350_vm9, %v996_v4, 2147483647  ;;  %v380_v38 = vsel %vm375_vm13, %v349_v19, 4294967295 }
 0x8bb   : > { %v353_v21 = vshra.s32 %v351_v20, 16  ;;  %v352_v23 = vand.u32 65535, %v351_v20  ;;  %vm382_vm0 = vcmp.eq.s32.totalorder %v1001_v6, %v380_v38  ;;  %vm381_vm2 = vcmp.lt.s32.totalorder %v1001_v6, %v380_v38 }
 0x8bd   : > { %v355_v22 = vcvt.s32.f32 %v353_v21  ;;  %v354_v25 = vcvt.s32.f32 %v352_v23 }
 0x8bf   : > { %356 = vmin.xlane.f32.xlu0 %v355_v22 }
 0x94c   : > { %v357_v24 = vpop.xlane.xlu0 %356 }
 0x94d   : > { %vm358_vm10 = vcmp.eq.f32.partialorder %v355_v22, %v357_v24  ;;  %v363_v27 = vcvt.f32.s32 %v357_v24 }
 0x94e   : > { %v359_v26 = vsel %vm358_vm10, %v354_v25, inf }
 0x94f   : > { %360 = vmin.xlane.f32.xlu1 %v359_v26  ;;  %v364_v29 = vshll.u32 %v363_v27, 16 }
 0x9dc   : > { %v361_v28 = vpop.xlane.xlu1 %360 }
 0x9dd   : > { %v362_v30 = vcvt.f32.s32 %v361_v28 }
 0x9df   : > { %v365_v31 = vadd.s32 %v364_v29, %v362_v30 }
 0x9e1   : > { %v366_v32 = vrot.slane %v365_v31, 4 }
 0x9e3   : > { %vm367_vm11 = vcmp.lt.s32.totalorder %v365_v31, %v366_v32 }
 0x9e4   : > { %v368_v33 = vsel %vm367_vm11, %v365_v31, %v366_v32 }
 0x9e5   : > { %v369_v34 = vrot.slane %v368_v33, 2 }
 0x9e7   : > { %vm370_vm12 = vcmp.lt.s32.totalorder %v368_v33, %v369_v34 }
 0x9e8   : > { %v371_v35 = vsel %vm370_vm12, %v368_v33, %v369_v34 }
 0x9e9   : > { %v372_v36 = vrot.slane %v371_v35, 1 }
 0x9eb   : > { %vm373_vm14 = vcmp.lt.s32.totalorder %v371_v35, %v372_v36 }
 0x9ec   : > { %v374_v37 = vsel %vm373_vm14, %v371_v35, %v372_v36 }
 0x9ed   : > { %v377_v39 = vsel %vm376_vm15, %v374_v37, 2147483647 }
 0x9ee   : > { %v378_v40 = vsel %vm375_vm13, %v374_v37, %v377_v39 }
 0x9ef   : > { %vm383_vm1 = vcmp.gt.s32.totalorder %v996_v4, %v378_v40 }
 0x9f0   : > { %vm384_vm3 = vmand %vm382_vm0, %vm383_vm1 }
 0x9f1   : > { %vm385_vm4 = vmor %vm381_vm2, %vm384_vm3 }
 0x9f2   : > { %v386_v41 = vsel %vm385_vm4, %v1001_v6, 4294967295 }
 0x9f3   : > { %v388_v42 = vshra.s32 %v386_v41, 16  ;;  %v387_v44 = vand.u32 65535, %v386_v41 }
 0x9f5   : > { %v390_v43 = vcvt.s32.f32 %v388_v42  ;;  %v389_v46 = vcvt.s32.f32 %v387_v44 }
 0x9f7   : > { %391 = vmax.xlane.f32.xlu0 %v390_v43 }
 0xa84   : > { %v392_v45 = vpop.xlane.xlu0 %391 }
 0xa85   : > { %vm393_vm5 = vcmp.eq.f32.partialorder %v390_v43, %v392_v45  ;;  %v398_v48 = vcvt.f32.s32 %v392_v45 }
 0xa86   : > { %v394_v47 = vsel %vm393_vm5, %v389_v46, -inf }
 0xa87   : > { %395 = vmax.xlane.f32.xlu1 %v394_v47  ;;  %v399_v50 = vshll.u32 %v398_v48, 16 }
 0xb14   : > { %v396_v49 = vpop.xlane.xlu1 %395 }
 0xb15   : > { %v397_v51 = vcvt.f32.s32 %v396_v49 }
 0xb17   : > { %v400_v52 = vadd.s32 %v399_v50, %v397_v51 }
 0xb19   : > { %v401_v53 = vrot.slane %v400_v52, 4 }
 0xb1b   : > { %vm402_vm6 = vcmp.gt.s32.totalorder %v400_v52, %v401_v53 }
 0xb1c   : > { %v403_v54 = vsel %vm402_vm6, %v400_v52, %v401_v53 }
 0xb1d   : > { %v404_v55 = vrot.slane %v403_v54, 2 }
 0xb1f   : > { %vm405_vm7 = vcmp.gt.s32.totalorder %v403_v54, %v404_v55 }
 0xb20   : > { %v406_v56 = vsel %vm405_vm7, %v403_v54, %v404_v55 }
 0xb21   : > { %v407_v57 = vrot.slane %v406_v56, 1 }
 0xb23   : > { %vm408_vm8 = vcmp.gt.s32.totalorder %v406_v56, %v407_v57 }
 0xb24   : > { %v409_v58 = vsel %vm408_vm8, %v406_v56, %v407_v57 }
 0xb25   : > { %vm410_vm9 = vcmp.eq.s32.totalorder %v386_v41, %v409_v58  ;;  %vm435_vm13 = vcmp.gt.s32.totalorder %v409_v58, 4294967295  ;;  %vm436_vm15 = vcmp.eq.s32.totalorder %v409_v58, 4294967295 }
 0xb26   : > { %v411_v59 = vsel %vm410_vm9, %v996_v4, 2147483647  ;;  %v440_v16 = vsel %vm435_vm13, %v409_v58, 4294967295 }
 0xb27   : > { %v413_v60 = vshra.s32 %v411_v59, 16  ;;  %v412_v62 = vand.u32 65535, %v411_v59  ;;  %vm442_vm0 = vcmp.eq.s32.totalorder %v1001_v6, %v440_v16  ;;  %vm441_vm2 = vcmp.lt.s32.totalorder %v1001_v6, %v440_v16 }
 0xb29   : > { %v415_v61 = vcvt.s32.f32 %v413_v60  ;;  %v414_v0 = vcvt.s32.f32 %v412_v62 }
 0xb2b   : > { %416 = vmin.xlane.f32.xlu0 %v415_v61 }
 0xbb8   : > { %v417_v63 = vpop.xlane.xlu0 %416 }
 0xbb9   : > { %vm418_vm10 = vcmp.eq.f32.partialorder %v415_v61, %v417_v63  ;;  %v423_v2 = vcvt.f32.s32 %v417_v63 }
 0xbba   : > { %v419_v1 = vsel %vm418_vm10, %v414_v0, inf }
 0xbbb   : > { %420 = vmin.xlane.f32.xlu1 %v419_v1  ;;  %v424_v7 = vshll.u32 %v423_v2, 16 }
 0xc48   : > { %v421_v3 = vpop.xlane.xlu1 %420 }
 0xc49   : > { %v422_v8 = vcvt.f32.s32 %v421_v3 }
 0xc4b   : > { %v425_v9 = vadd.s32 %v424_v7, %v422_v8 }
 0xc4d   : > { %v426_v10 = vrot.slane %v425_v9, 4 }
 0xc4f   : > { %vm427_vm11 = vcmp.lt.s32.totalorder %v425_v9, %v426_v10 }
 0xc50   : > { %v428_v11 = vsel %vm427_vm11, %v425_v9, %v426_v10 }
 0xc51   : > { %v429_v12 = vrot.slane %v428_v11, 2 }
 0xc53   : > { %vm430_vm12 = vcmp.lt.s32.totalorder %v428_v11, %v429_v12 }
 0xc54   : > { %v431_v13 = vsel %vm430_vm12, %v428_v11, %v429_v12 }
 0xc55   : > { %v432_v14 = vrot.slane %v431_v13, 1 }
 0xc57   : > { %vm433_vm14 = vcmp.lt.s32.totalorder %v431_v13, %v432_v14 }
 0xc58   : > { %v434_v15 = vsel %vm433_vm14, %v431_v13, %v432_v14 }
 0xc59   : > { %v437_v17 = vsel %vm436_vm15, %v434_v15, 2147483647 }
 0xc5a   : > { %v438_v18 = vsel %vm435_vm13, %v434_v15, %v437_v17 }
 0xc5b   : > { %vm443_vm1 = vcmp.gt.s32.totalorder %v996_v4, %v438_v18 }
 0xc5c   : > { %vm444_vm3 = vmand %vm442_vm0, %vm443_vm1 }
 0xc5d   : > { %vm445_vm4 = vmor %vm441_vm2, %vm444_vm3 }
 0xc5e   : > { %v446_v19 = vsel %vm445_vm4, %v1001_v6, 4294967295 }
 0xc5f   : > { %v448_v20 = vshra.s32 %v446_v19, 16  ;;  %v447_v22 = vand.u32 65535, %v446_v19 }
 0xc61   : > { %v450_v21 = vcvt.s32.f32 %v448_v20  ;;  %v449_v24 = vcvt.s32.f32 %v447_v22 }
 0xc63   : > { %451 = vmax.xlane.f32.xlu0 %v450_v21 }
 0xcf0   : > { %v452_v23 = vpop.xlane.xlu0 %451 }
 0xcf1   : > { %vm453_vm5 = vcmp.eq.f32.partialorder %v450_v21, %v452_v23  ;;  %v458_v26 = vcvt.f32.s32 %v452_v23 }
 0xcf2   : > { %v454_v25 = vsel %vm453_vm5, %v449_v24, -inf }
 0xcf3   : > { %455 = vmax.xlane.f32.xlu1 %v454_v25  ;;  %v459_v28 = vshll.u32 %v458_v26, 16 }
 0xd80   : > { %v456_v27 = vpop.xlane.xlu1 %455 }
 0xd81   : > { %v457_v29 = vcvt.f32.s32 %v456_v27 }
 0xd83   : > { %v460_v30 = vadd.s32 %v459_v28, %v457_v29 }
 0xd85   : > { %v461_v31 = vrot.slane %v460_v30, 4 }
 0xd87   : > { %vm462_vm6 = vcmp.gt.s32.totalorder %v460_v30, %v461_v31 }
 0xd88   : > { %v463_v32 = vsel %vm462_vm6, %v460_v30, %v461_v31 }
 0xd89   : > { %v464_v33 = vrot.slane %v463_v32, 2 }
 0xd8b   : > { %vm465_vm7 = vcmp.gt.s32.totalorder %v463_v32, %v464_v33 }
 0xd8c   : > { %v466_v34 = vsel %vm465_vm7, %v463_v32, %v464_v33 }
 0xd8d   : > { %v467_v35 = vrot.slane %v466_v34, 1 }
 0xd8f   : > { %vm468_vm8 = vcmp.gt.s32.totalorder %v466_v34, %v467_v35 }
 0xd90   : > { %v469_v36 = vsel %vm468_vm8, %v466_v34, %v467_v35 }
 0xd91   : > { %vm470_vm9 = vcmp.eq.s32.totalorder %v446_v19, %v469_v36  ;;  %vm495_vm13 = vcmp.gt.s32.totalorder %v469_v36, 4294967295  ;;  %vm496_vm15 = vcmp.eq.s32.totalorder %v469_v36, 4294967295 }
 0xd92   : > { %v471_v37 = vsel %vm470_vm9, %v996_v4, 2147483647  ;;  %v500_v55 = vsel %vm495_vm13, %v469_v36, 4294967295 }
 0xd93   : > { %v473_v38 = vshra.s32 %v471_v37, 16  ;;  %v472_v40 = vand.u32 65535, %v471_v37  ;;  %vm502_vm0 = vcmp.eq.s32.totalorder %v1001_v6, %v500_v55  ;;  %vm501_vm2 = vcmp.lt.s32.totalorder %v1001_v6, %v500_v55 }
 0xd95   : > { %v475_v39 = vcvt.s32.f32 %v473_v38  ;;  %v474_v42 = vcvt.s32.f32 %v472_v40 }
 0xd97   : > { %476 = vmin.xlane.f32.xlu0 %v475_v39 }
 0xe24   : > { %v477_v41 = vpop.xlane.xlu0 %476 }
 0xe25   : > { %vm478_vm10 = vcmp.eq.f32.partialorder %v475_v39, %v477_v41  ;;  %v483_v44 = vcvt.f32.s32 %v477_v41 }
 0xe26   : > { %v479_v43 = vsel %vm478_vm10, %v474_v42, inf }
 0xe27   : > { %480 = vmin.xlane.f32.xlu1 %v479_v43  ;;  %v484_v46 = vshll.u32 %v483_v44, 16 }
 0xeb4   : > { %v481_v45 = vpop.xlane.xlu1 %480 }
 0xeb5   : > { %v482_v47 = vcvt.f32.s32 %v481_v45 }
 0xeb7   : > { %v485_v48 = vadd.s32 %v484_v46, %v482_v47 }
 0xeb9   : > { %v486_v49 = vrot.slane %v485_v48, 4 }
 0xebb   : > { %vm487_vm11 = vcmp.lt.s32.totalorder %v485_v48, %v486_v49 }
 0xebc   : > { %v488_v50 = vsel %vm487_vm11, %v485_v48, %v486_v49 }
 0xebd   : > { %v489_v51 = vrot.slane %v488_v50, 2 }
 0xebf   : > { %vm490_vm12 = vcmp.lt.s32.totalorder %v488_v50, %v489_v51 }
 0xec0   : > { %v491_v52 = vsel %vm490_vm12, %v488_v50, %v489_v51 }
 0xec1   : > { %v492_v53 = vrot.slane %v491_v52, 1 }
 0xec3   : > { %vm493_vm14 = vcmp.lt.s32.totalorder %v491_v52, %v492_v53 }
 0xec4   : > { %v494_v54 = vsel %vm493_vm14, %v491_v52, %v492_v53 }
 0xec5   : > { %v497_v56 = vsel %vm496_vm15, %v494_v54, 2147483647 }
 0xec6   : > { %v498_v57 = vsel %vm495_vm13, %v494_v54, %v497_v56 }
 0xec7   : > { %vm503_vm1 = vcmp.gt.s32.totalorder %v996_v4, %v498_v57 }
 0xec8   : > { %vm504_vm3 = vmand %vm502_vm0, %vm503_vm1 }
 0xec9   : > { %vm505_vm4 = vmor %vm501_vm2, %vm504_vm3 }
 0xeca   : > { %v506_v58 = vsel %vm505_vm4, %v1001_v6, 4294967295 }
 0xecb   : > { %v508_v59 = vshra.s32 %v506_v58, 16  ;;  %v507_v61 = vand.u32 65535, %v506_v58 }
 0xecd   : > { %v510_v60 = vcvt.s32.f32 %v508_v59  ;;  %v509_v63 = vcvt.s32.f32 %v507_v61 }
 0xecf   : > { %511 = vmax.xlane.f32.xlu0 %v510_v60 }
 0xf5c   : > { %v512_v62 = vpop.xlane.xlu0 %511 }
 0xf5d   : > { %vm513_vm5 = vcmp.eq.f32.partialorder %v510_v60, %v512_v62  ;;  %v518_v1 = vcvt.f32.s32 %v512_v62 }
 0xf5e   : > { %v514_v0 = vsel %vm513_vm5, %v509_v63, -inf }
 0xf5f   : > { %515 = vmax.xlane.f32.xlu1 %v514_v0  ;;  %v519_v3 = vshll.u32 %v518_v1, 16 }
 0xfec   : > { %v516_v2 = vpop.xlane.xlu1 %515 }
 0xfed   : > { %v517_v7 = vcvt.f32.s32 %v516_v2 }
 0xfef   : > { %v520_v8 = vadd.s32 %v519_v3, %v517_v7 }
 0xff1   : > { %v521_v9 = vrot.slane %v520_v8, 4 }
 0xff3   : > { %vm522_vm6 = vcmp.gt.s32.totalorder %v520_v8, %v521_v9 }
 0xff4   : > { %v523_v10 = vsel %vm522_vm6, %v520_v8, %v521_v9 }
 0xff5   : > { %v524_v11 = vrot.slane %v523_v10, 2 }
 0xff7   : > { %vm525_vm7 = vcmp.gt.s32.totalorder %v523_v10, %v524_v11 }
 0xff8   : > { %v526_v12 = vsel %vm525_vm7, %v523_v10, %v524_v11 }
 0xff9   : > { %v527_v13 = vrot.slane %v526_v12, 1 }
 0xffb   : > { %vm528_vm8 = vcmp.gt.s32.totalorder %v526_v12, %v527_v13 }
 0xffc   : > { %v529_v14 = vsel %vm528_vm8, %v526_v12, %v527_v13 }
 0xffd   : > { %vm530_vm9 = vcmp.eq.s32.totalorder %v506_v58, %v529_v14  ;;  %vm555_vm13 = vcmp.gt.s32.totalorder %v529_v14, 4294967295  ;;  %vm556_vm15 = vcmp.eq.s32.totalorder %v529_v14, 4294967295 }
 0xffe   : > { %v531_v15 = vsel %vm530_vm9, %v996_v4, 2147483647  ;;  %v560_v33 = vsel %vm555_vm13, %v529_v14, 4294967295 }
 0xfff   : > { %v533_v16 = vshra.s32 %v531_v15, 16  ;;  %v532_v18 = vand.u32 65535, %v531_v15  ;;  %vm562_vm0 = vcmp.eq.s32.totalorder %v1001_v6, %v560_v33  ;;  %vm561_vm2 = vcmp.lt.s32.totalorder %v1001_v6, %v560_v33 }
0x1001   : > { %v535_v17 = vcvt.s32.f32 %v533_v16  ;;  %v534_v20 = vcvt.s32.f32 %v532_v18 }
0x1003   : > { %536 = vmin.xlane.f32.xlu0 %v535_v17 }
0x1090   : > { %v537_v19 = vpop.xlane.xlu0 %536 }
0x1091   : > { %vm538_vm10 = vcmp.eq.f32.partialorder %v535_v17, %v537_v19  ;;  %v543_v22 = vcvt.f32.s32 %v537_v19 }
0x1092   : > { %v539_v21 = vsel %vm538_vm10, %v534_v20, inf }
0x1093   : > { %540 = vmin.xlane.f32.xlu1 %v539_v21  ;;  %v544_v24 = vshll.u32 %v543_v22, 16 }
0x1120   : > { %v541_v23 = vpop.xlane.xlu1 %540 }
0x1121   : > { %v542_v25 = vcvt.f32.s32 %v541_v23 }
0x1123   : > { %v545_v26 = vadd.s32 %v544_v24, %v542_v25 }
0x1125   : > { %v546_v27 = vrot.slane %v545_v26, 4 }
0x1127   : > { %vm547_vm11 = vcmp.lt.s32.totalorder %v545_v26, %v546_v27 }
0x1128   : > { %v548_v28 = vsel %vm547_vm11, %v545_v26, %v546_v27 }
0x1129   : > { %v549_v29 = vrot.slane %v548_v28, 2 }
0x112b   : > { %vm550_vm12 = vcmp.lt.s32.totalorder %v548_v28, %v549_v29 }
0x112c   : > { %v551_v30 = vsel %vm550_vm12, %v548_v28, %v549_v29 }
0x112d   : > { %v552_v31 = vrot.slane %v551_v30, 1 }
0x112f   : > { %vm553_vm14 = vcmp.lt.s32.totalorder %v551_v30, %v552_v31 }
0x1130   : > { %v554_v32 = vsel %vm553_vm14, %v551_v30, %v552_v31 }
0x1131   : > { %v557_v34 = vsel %vm556_vm15, %v554_v32, 2147483647 }
0x1132   : > { %v558_v35 = vsel %vm555_vm13, %v554_v32, %v557_v34 }
0x1133   : > { %vm563_vm1 = vcmp.gt.s32.totalorder %v996_v4, %v558_v35 }
0x1134   : > { %vm564_vm3 = vmand %vm562_vm0, %vm563_vm1 }
0x1135   : > { %vm565_vm4 = vmor %vm561_vm2, %vm564_vm3 }
0x1136   : > { %v566_v36 = vsel %vm565_vm4, %v1001_v6, 4294967295 }
0x1137   : > { %v568_v37 = vshra.s32 %v566_v36, 16  ;;  %v567_v39 = vand.u32 65535, %v566_v36 }
0x1139   : > { %v570_v38 = vcvt.s32.f32 %v568_v37  ;;  %v569_v41 = vcvt.s32.f32 %v567_v39 }
0x113b   : > { %571 = vmax.xlane.f32.xlu0 %v570_v38 }
0x11c8   : > { %v572_v40 = vpop.xlane.xlu0 %571 }
0x11c9   : > { %vm573_vm5 = vcmp.eq.f32.partialorder %v570_v38, %v572_v40  ;;  %v578_v43 = vcvt.f32.s32 %v572_v40 }
0x11ca   : > { %v574_v42 = vsel %vm573_vm5, %v569_v41, -inf }
0x11cb   : > { %575 = vmax.xlane.f32.xlu1 %v574_v42  ;;  %v579_v45 = vshll.u32 %v578_v43, 16 }
0x1258   : > { %v576_v44 = vpop.xlane.xlu1 %575 }
0x1259   : > { %v577_v46 = vcvt.f32.s32 %v576_v44 }
0x125b   : > { %v580_v47 = vadd.s32 %v579_v45, %v577_v46 }
0x125d   : > { %v581_v48 = vrot.slane %v580_v47, 4 }
0x125f   : > { %vm582_vm6 = vcmp.gt.s32.totalorder %v580_v47, %v581_v48 }
0x1260   : > { %v583_v49 = vsel %vm582_vm6, %v580_v47, %v581_v48 }
0x1261   : > { %v584_v50 = vrot.slane %v583_v49, 2 }
0x1263   : > { %vm585_vm7 = vcmp.gt.s32.totalorder %v583_v49, %v584_v50 }
0x1264   : > { %v586_v51 = vsel %vm585_vm7, %v583_v49, %v584_v50 }
0x1265   : > { %v587_v52 = vrot.slane %v586_v51, 1 }
0x1267   : > { %vm588_vm8 = vcmp.gt.s32.totalorder %v586_v51, %v587_v52 }
0x1268   : > { %v589_v53 = vsel %vm588_vm8, %v586_v51, %v587_v52 }
0x1269   : > { %vm590_vm9 = vcmp.eq.s32.totalorder %v566_v36, %v589_v53  ;;  %vm615_vm14 = vcmp.gt.s32.totalorder %v589_v53, 4294967295  ;;  %vm616_vm15 = vcmp.eq.s32.totalorder %v589_v53, 4294967295 }
0x126a   : > { %v591_v54 = vsel %vm590_vm9, %v996_v4, 2147483647  ;;  %v620_v13 = vsel %vm615_vm14, %v589_v53, 4294967295 }
0x126b   : > { %v593_v55 = vshra.s32 %v591_v54, 16  ;;  %v592_v57 = vand.u32 65535, %v591_v54  ;;  %vm623_vm0 = vcmp.eq.s32.totalorder %v1001_v6, %v620_v13  ;;  %vm622_vm2 = vcmp.gt.s32.totalorder %v1001_v6, %v620_v13 }
0x126d   : > { %v595_v56 = vcvt.s32.f32 %v593_v55  ;;  %v594_v59 = vcvt.s32.f32 %v592_v57 }
0x126f   : > { %596 = vmin.xlane.f32.xlu0 %v595_v56 }
0x12fc   : > { %v597_v58 = vpop.xlane.xlu0 %596 }
0x12fd   : > { %vm598_vm10 = vcmp.eq.f32.partialorder %v595_v56, %v597_v58  ;;  %v603_v61 = vcvt.f32.s32 %v597_v58 }
0x12fe   : > { %v599_v60 = vsel %vm598_vm10, %v594_v59, inf }
0x12ff   : > { %600 = vmin.xlane.f32.xlu1 %v599_v60  ;;  %v604_v63 = vshll.u32 %v603_v61, 16 }
0x138c   : > { %v601_v62 = vpop.xlane.xlu1 %600 }
0x138d   : > { %v602_v0 = vcvt.f32.s32 %v601_v62 }
0x138f   : > { %v605_v1 = vadd.s32 %v604_v63, %v602_v0 }
0x1391   : > { %v606_v2 = vrot.slane %v605_v1, 4 }
0x1393   : > { %vm607_vm11 = vcmp.lt.s32.totalorder %v605_v1, %v606_v2 }
0x1394   : > { %v608_v3 = vsel %vm607_vm11, %v605_v1, %v606_v2 }
0x1395   : > { %v609_v7 = vrot.slane %v608_v3, 2 }
0x1397   : > { %vm610_vm12 = vcmp.lt.s32.totalorder %v608_v3, %v609_v7 }
0x1398   : > { %v611_v8 = vsel %vm610_vm12, %v608_v3, %v609_v7 }
0x1399   : > { %v612_v9 = vrot.slane %v611_v8, 1 }
0x139b   : > { %vm613_vm13 = vcmp.lt.s32.totalorder %v611_v8, %v612_v9 }
0x139c   : > { %v614_v10 = vsel %vm613_vm13, %v611_v8, %v612_v9 }
0x139d   : > { %v617_v11 = vsel %vm616_vm15, %v614_v10, 2147483647 }
0x139e   : > { %v618_v12 = vsel %vm615_vm14, %v614_v10, %v617_v11 }
0x139f   : > { %v621_v14 = vadd.s32 1, %v618_v12 }
0x13a1   : > { %vm624_vm1 = vcmp.lt.s32.totalorder %v996_v4, %v621_v14 }
0x13a2   : > { %vm625_vm3 = vmand %vm623_vm0, %vm624_vm1 }
0x13a3   : > { %vm626_vm4 = vmor %vm622_vm2, %vm625_vm3 }
0x13a4   : > { %v627_v15 = vsel %vm626_vm4, %v998_v5, 0.0 }
0x13a5   : > { %628 = vst [vmem:[%s131_s25] sm:$0xff] %v627_v15 }
0x13a6   : > { %814 = shalt.err (!%p811_p4)
}
0x13a7   : > { %s815_s5 = scalar_lea.hbm %s1052_s29, 128  ;;  %s819_s14 = scalar_lea.hbm %s1098_s1, 256 }
0x13a8   : > { %p816_p5 = scmp.ne.s32.totalorder %s1052_s29, %s815_s5  ;;  %p820_p0 = scmp.lt.u32.totalorder %s1052_s29, %s1098_s1 }
0x13a9   : > { %p821_p1 = scmp.lt.u32.totalorder %s819_s14, %s815_s5  ;;  %p823_p6 = scmp.lt.u32.totalorder %s815_s5, %s1052_s29 }
0x13aa   : > { %p817_p8 = pnand %p816_p5, %p1107_p11 }
0x13ab   : > { %p822_p3 = por %p821_p1, %p820_p0 }
0x13ac   : > { %p818_p9 = pneg %p817_p8 }
0x13ad   : > { %p824_p12 = por %p823_p6, %p822_p3 }
0x13af   : > { %p825_p13 = pnand %p824_p12, %p818_p9 }
0x13b1   : > { %828 = shalt.err (!%p825_p13)
}
0x13b2   : > { %727 = dma.vmem_to_hbm [thread:$0]  (%p1107_p11), %s1054_s26, 128, %s1052_s29, %s630_s10  }
0x13b3 PF: > { %s655_s21 = sand.u32 1, %s855_s6   ;;  %p1108_p7 = scmp.ne.s32.totalorder %s1103_s19, 0 }
0x13b4   : > { %p1109_p10 = scmp.ge.s32.totalorder %s867_s9, 2  ;;  %s656_s22 = scalar_lea.sflag [#allocation4], %s655_s21 }
0x13b6   : > { %p734_p2 = pnand %p1109_p10, %p1108_p7 }
0x13b8   : > { %850 = dma.done.wait (!%p734_p2), %s656_s22, 128  }
0x13b9   : > { %852 = vsyncadd (!%p734_p2), %s656_s22, 4294967168  ;;  %p14_p4 = scmp.ge.s32.totalorder %s906_s12, 4   ;;  %s1110_s6 = smov %s859_s7 }
0x13ba   : > { %s1111_s7 = smov %s863_s8  ;;  %s1112_s8 = smov %s918_s15 }
0x13bb   : > { %s1113_s9 = smov %s906_s12  ;;  %16 = sbr.rel (!%p14_p4) target bundleno = 5 (0x5), region = 69 }
0x13c2   :  { %661 = vsyncpa [#allocation3], 1 }
0x13c3   :  { %663 = vsyncpa [#allocation3 + $0x1], 1 }
0x13c4   :  { %664 = vsyncpa [#allocation4], 1 }
0x13c5   :  { %666 = vsyncpa [#allocation4 + $0x1], 1 }

</bundles_post_ra>
